<compile_context>
chip_gen: v5e
topology: v5e:2x2
jax: 0.10.0
libtpu: 0.0.40
codegen_flags: <defaults>
</compile_context>

<pallas_src>
import numpy as np
import jax
import jax.numpy as jnp
from jax.experimental import pallas as pl
from jax.experimental.pallas import tpu as pltpu

_EPS = 1e-7
_TEMP = 0.1
_INV_TEMP = 1.0 / _TEMP


# ----------------------------------------------------------------------------- kernel
def _fused_mlp_kernel(cd_ref,                       # SMEM (10,) f32 scalar prefetch
                      x_ref,                        # (Din,  tile_b)
                      u1_ref, u2_ref, u3_ref,       # noise for the 3 hidden blocks
                      u4_ref, u5_ref,               # noise for the two heads
                      w1_ref, b1_ref,               # (H1, Din),  (H1, 1)
                      w2_ref, b2_ref,               # (H2, H1),   (H2, 1)
                      w3_ref, b3_ref,               # (Dout, H2), (Dout, 1)
                      wh_ref, bh_ref,               # (Dout, 2),  (2, 1)
                      out_ref):                     # (2, tile_b): row0=mean row1=log_var
    """Whole 5-block ConcreteDropout MLP forward, batch on the lane axis."""

    def concrete_dropout(h, u_ref, idx):
        a = cd_ref[2 * idx]                  # log(p+eps) - log(1-p+eps)
        inv_retain = cd_ref[2 * idx + 1]     # 1 / (1 - p)
        u = u_ref[...]
        # logit(u) with eps guards: one EUP log (of a ratio) instead of two.
        drop_logit = (a + jnp.log((u + _EPS) / (1.0 - u + _EPS))) * _INV_TEMP
        keep = jax.nn.sigmoid(-drop_logit)   # == 1 - sigmoid(drop_logit)
        return h * (keep * inv_retain)
    # TODO(synk): on v6e/v7x the mask math above could run in bf16 for ~2x
    # VPU/EUP throughput; kept f32 so the same kernel is exact on v5e too.

    def hidden(h, w_ref, b_ref):             # Linear (out,in) + ReLU, batch on lanes
        y = jnp.dot(w_ref[...], h, preferred_element_type=jnp.float32) + b_ref[...]
        return jnp.maximum(y, 0.0)

    x = x_ref[...]
    h1 = hidden(concrete_dropout(x, u1_ref, 0), w1_ref, b1_ref)
    h2 = hidden(concrete_dropout(h1, u2_ref, 1), w2_ref, b2_ref)
    h3 = hidden(concrete_dropout(h2, u3_ref, 2), w3_ref, b3_ref)

    # Two heads reuse the VMEM-resident h3 with independent dropout masks.
    # N=1 matmuls -> VPU multiply + cross-sublane reduce (MXU left alone).
    wh = wh_ref[...]                                               # (Dout, 2)
    d_mu = concrete_dropout(h3, u4_ref, 3)                         # (Dout, tile_b)
    d_lv = concrete_dropout(h3, u5_ref, 4)
    mean_row = jnp.sum(wh[:, 0:1] * d_mu, axis=0, keepdims=True)   # (1, tile_b)
    lvar_row = jnp.sum(wh[:, 1:2] * d_lv, axis=0, keepdims=True)   # (1, tile_b)
    out = jnp.concatenate([mean_row, lvar_row], axis=0) + bh_ref[...]
    out_ref[...] = out.astype(out_ref.dtype)


# ----------------------------------------------------------------------------- wrapper
def _choose_tile_b(batch, max_tile_b):
    """Lane-dense batch tile: whole batch if small, else a 128-multiple sized so
    the grid has >= 2 steps (keeps both v7x TensorCores busy)."""
    if batch <= 256:
        return batch
    half = -(-batch // 2)                      # cdiv(batch, 2)
    tile = ((half + 127) // 128) * 128
    return max(128, min(max_tile_b, tile))


def fused_forward(x, params, noises, *, max_tile_b=2048):
    """Fused 5-block ConcreteDropout MLP.

    x      : (B, Din) f32
    noises : 5 uniform arrays (B, Din), (B, H1), (B, H2), (B, Dout), (B, Dout)
    returns: mean (B, 1), log_var (B, 1)
    """
    B, Din = x.shape
    H1 = params["w1"].shape[0]
    H2 = params["w2"].shape[0]
    Dout = params["w3"].shape[0]

    # Per-block scalar dropout constants -> SMEM via scalar prefetch.
    p = jax.nn.sigmoid(params["p_logit"])                           # (5,)
    a = jnp.log(p + _EPS) - jnp.log(1.0 - p + _EPS)
    inv_retain = 1.0 / (1.0 - p)
    cd_params = jnp.stack([a, inv_retain], axis=1).reshape(-1).astype(jnp.float32)

    # Batch-on-lanes layout plumbing (done once in the wrapper, not per step).
    xT = x.T                                                        # (Din, B)
    uT = [u.T for u in noises]
    b_col = lambda b: b.reshape(-1, 1)
    head_w = jnp.concatenate([params["w_mu"], params["w_lv"]], axis=0).T   # (Dout, 2)
    head_b = jnp.concatenate([params["b_mu"], params["b_lv"]]).reshape(2, 1)

    tile_b = _choose_tile_b(B, max_tile_b)
    grid = (pl.cdiv(B, tile_b),)

    whole = lambda shape: pl.BlockSpec(shape, lambda i, *_: (0, 0))
    batched = lambda rows: pl.BlockSpec((rows, tile_b), lambda i, *_: (0, i))

    grid_spec = pltpu.PrefetchScalarGridSpec(
        num_scalar_prefetch=1,                       # cd_params -> SMEM
        grid=grid,
        in_specs=[
            batched(Din),                            # x^T
            batched(Din), batched(H1), batched(H2),  # u1, u2, u3
            batched(Dout), batched(Dout),            # u4, u5
            whole((H1, Din)), whole((H1, 1)),        # w1, b1
            whole((H2, H1)), whole((H2, 1)),         # w2, b2
            whole((Dout, H2)), whole((Dout, 1)),     # w3, b3
            whole((Dout, 2)), whole((2, 1)),         # head_w, head_b
        ],
        out_specs=pl.BlockSpec((2, tile_b), lambda i, *_: (0, i)),
    )

    out = pl.pallas_call(
        _fused_mlp_kernel,
        out_shape=jax.ShapeDtypeStruct((2, B), jnp.float32),
        grid_spec=grid_spec,
        compiler_params=pltpu.CompilerParams(
            dimension_semantics=("parallel",),
        ),
    )(cd_params,
      xT, uT[0], uT[1], uT[2], uT[3], uT[4],
      params["w1"], b_col(params["b1"]),
      params["w2"], b_col(params["b2"]),
      params["w3"], b_col(params["b3"]),
      head_w, head_b)

    mean = out[0][:, None]
    log_var = out[1][:, None]
    return mean, log_var


def regularization(input_dim, params,
                   weight_regularizer=1e-6, dropout_regularizer=1e-5):
    """ConcreteDropout regularizer — weights/p only, hoisted out of the kernel."""
    p = jax.nn.sigmoid(params["p_logit"])
    H1 = params["w1"].shape[0]
    H2 = params["w2"].shape[0]
    Dout = params["w3"].shape[0]
    layers = [
        (params["w1"], params["b1"], input_dim),
        (params["w2"], params["b2"], H1),
        (params["w3"], params["b3"], H2),
        (params["w_mu"], params["b_mu"], Dout),
        (params["w_lv"], params["b_lv"], Dout),
    ]
    reg = jnp.float32(0.0)
    for i, (w, b, in_dim) in enumerate(layers):
        pi = p[i]
        ssq = jnp.sum(w * w) + jnp.sum(b * b)
        w_reg = weight_regularizer * ssq / (1.0 - pi)
        d_reg = pi * jnp.log(pi) + (1.0 - pi) * jnp.log(1.0 - pi)
        d_reg = d_reg * dropout_regularizer * in_dim
        reg = reg + w_reg + d_reg
    return reg


def make_dropout_noise(key, batch, feature_dims):
    keys = jax.random.split(key, len(feature_dims))
    return tuple(jax.random.uniform(k, (batch, d), jnp.float32)
                 for k, d in zip(keys, feature_dims))


def model_forward(x, params, noise_key,
                  weight_regularizer=1e-6, dropout_regularizer=1e-5):
    """Forward pass of the Model: returns (mean, log_var, regularization)."""
    B, Din = x.shape
    H1 = params["w1"].shape[0]
    H2 = params["w2"].shape[0]
    Dout = params["w3"].shape[0]
    noises = make_dropout_noise(noise_key, B, (Din, H1, H2, Dout, Dout))
    mean, log_var = fused_forward(x, params, noises)
    reg = regularization(Din, params, weight_regularizer, dropout_regularizer)
    return mean, log_var, reg


# ----------------------------------------------------------------------------- init / ref
def init_params(key, input_size, hidden_units, output_size):
    """Deterministic synthetic init, PyTorch nn.Linear-style uniform, (out, in) layout."""
    ks = jax.random.split(key, 10)

    def linear(kw, kb, din, dout):
        bound = 1.0 / np.sqrt(din)
        w = jax.random.uniform(kw, (dout, din), jnp.float32, -bound, bound)
        b = jax.random.uniform(kb, (dout,), jnp.float32, -bound, bound)
        return w, b

    w1, b1 = linear(ks[0], ks[1], input_size, hidden_units[0])
    w2, b2 = linear(ks[2], ks[3], hidden_units[0], hidden_units[1])
    w3, b3 = linear(ks[4], ks[5], hidden_units[1], output_size)
    w_mu, b_mu = linear(ks[6], ks[7], output_size, 1)
    w_lv, b_lv = linear(ks[8], ks[9], output_size, 1)

    # p_logit: uniform(logit(0.1), logit(0.1)) == logit(0.1) exactly.
    p_logit_init = float(np.log(0.1) - np.log(1.0 - 0.1))
    p_logit = jnp.full((5,), p_logit_init, dtype=jnp.float32)

    return dict(w1=w1, b1=b1, w2=w2, b2=b2, w3=w3, b3=b3,
                w_mu=w_mu, b_mu=b_mu, w_lv=w_lv, b_lv=b_lv,
                p_logit=p_logit)


def reference_forward(x, params, noises):
    """Plain-JAX reference matching the PyTorch module, using the same uniforms."""
    p = jax.nn.sigmoid(params["p_logit"])

    def cd(h, u, pi):
        drop_prob = (jnp.log(pi + _EPS) - jnp.log(1.0 - pi + _EPS)
                     + jnp.log(u + _EPS) - jnp.log(1.0 - u + _EPS))
        drop_prob = jax.nn.sigmoid(drop_prob / _TEMP)
        return h * (1.0 - drop_prob) / (1.0 - pi)

    def lin(h, w, b):
        return h @ w.T + b

    h1 = jax.nn.relu(lin(cd(x, noises[0], p[0]), params["w1"], params["b1"]))
    h2 = jax.nn.relu(lin(cd(h1, noises[1], p[1]), params["w2"], params["b2"]))
    h3 = jax.nn.relu(lin(cd(h2, noises[2], p[2]), params["w3"], params["b3"]))
    mean = lin(cd(h3, noises[3], p[3]), params["w_mu"], params["b_mu"])
    log_var = lin(cd(h3, noises[4], p[4]), params["w_lv"], params["b_lv"])
    return mean, log_var


# ----------------------------------------------------------------------------- main
if __name__ == "__main__":
    key = jax.random.PRNGKey(0)
    k_param, k_x, k_noise = jax.random.split(key, 3)

    input_size = 32
    hidden_units = (32, 32)
    output_size = 16
    batch = 8

    params = init_params(k_param, input_size, hidden_units, output_size)
    x = jax.random.normal(k_x, (batch, input_size), jnp.float32)

    fwd = jax.jit(model_forward)
    mean, log_var, reg = fwd(x, params, k_noise)
    jax.block_until_ready((mean, log_var, reg))

    assert mean.shape == (batch, 1)
    assert log_var.shape == (batch, 1)
    assert reg.shape == ()
    assert bool(jnp.all(jnp.isfinite(mean)))
    assert bool(jnp.all(jnp.isfinite(log_var)))
    assert bool(jnp.isfinite(reg))

    # Numerical check against a plain-JAX reference fed the exact same uniforms.
    noises = make_dropout_noise(k_noise, batch,
                                (input_size, hidden_units[0], hidden_units[1],
                                 output_size, output_size))
    ref_mean, ref_log_var = reference_forward(x, params, noises)
    assert bool(jnp.allclose(mean, ref_mean, rtol=1e-4, atol=1e-5))
    assert bool(jnp.allclose(log_var, ref_log_var, rtol=1e-4, atol=1e-5))

    print("KERNEL_OK")
</pallas_src>

<mosaic_0001>
module attributes {stable_mosaic.version = 11 : i64} {
  func.func @_fused_mlp_kernel(%arg0: i32, %arg1: memref<10xf32, #tpu.memory_space<smem>>, %arg2: memref<32x8xf32, #tpu.memory_space<vmem>>, %arg3: memref<32x8xf32, #tpu.memory_space<vmem>>, %arg4: memref<32x8xf32, #tpu.memory_space<vmem>>, %arg5: memref<32x8xf32, #tpu.memory_space<vmem>>, %arg6: memref<16x8xf32, #tpu.memory_space<vmem>>, %arg7: memref<16x8xf32, #tpu.memory_space<vmem>>, %arg8: memref<32x32xf32, #tpu.memory_space<vmem>>, %arg9: memref<32x1xf32, #tpu.memory_space<vmem>>, %arg10: memref<32x32xf32, #tpu.memory_space<vmem>>, %arg11: memref<32x1xf32, #tpu.memory_space<vmem>>, %arg12: memref<16x32xf32, #tpu.memory_space<vmem>>, %arg13: memref<16x1xf32, #tpu.memory_space<vmem>>, %arg14: memref<16x2xf32, #tpu.memory_space<vmem>>, %arg15: memref<2x1xf32, #tpu.memory_space<vmem>>, %arg16: memref<2x8xf32, #tpu.memory_space<vmem>>) attributes {dimension_semantics = [#tpu.dimension_semantics<parallel>], iteration_bounds = array<i64: 1>, scalar_prefetch = 1 : i64, scratch_operands = 0 : i64, tpu.core_type = #tpu.core_type<tc>, window_params = [{transform_indices = @transform_0, window_bounds = array<i64: 32, 8>}, {transform_indices = @transform_1, window_bounds = array<i64: 32, 8>}, {transform_indices = @transform_2, window_bounds = array<i64: 32, 8>}, {transform_indices = @transform_3, window_bounds = array<i64: 32, 8>}, {transform_indices = @transform_4, window_bounds = array<i64: 16, 8>}, {transform_indices = @transform_5, window_bounds = array<i64: 16, 8>}, {pipeline_mode = #tpu.pipeline_mode<synchronous>, transform_indices = @transform_6, window_bounds = array<i64: 32, 32>}, {pipeline_mode = #tpu.pipeline_mode<synchronous>, transform_indices = @transform_7, window_bounds = array<i64: 32, 1>}, {pipeline_mode = #tpu.pipeline_mode<synchronous>, transform_indices = @transform_8, window_bounds = array<i64: 32, 32>}, {pipeline_mode = #tpu.pipeline_mode<synchronous>, transform_indices = @transform_9, window_bounds = array<i64: 32, 1>}, {pipeline_mode = #tpu.pipeline_mode<synchronous>, transform_indices = @transform_10, window_bounds = array<i64: 16, 32>}, {pipeline_mode = #tpu.pipeline_mode<synchronous>, transform_indices = @transform_11, window_bounds = array<i64: 16, 1>}, {pipeline_mode = #tpu.pipeline_mode<synchronous>, transform_indices = @transform_12, window_bounds = array<i64: 16, 2>}, {pipeline_mode = #tpu.pipeline_mode<synchronous>, transform_indices = @transform_13, window_bounds = array<i64: 2, 1>}, {transform_indices = @transform_14, window_bounds = array<i64: 2, 8>}]} {
    %c0 = arith.constant 0 : index
    %c0_0 = arith.constant 0 : index
    %0 = vector.load %arg2[%c0, %c0_0] : memref<32x8xf32, #tpu.memory_space<vmem>>, vector<32x8xf32>
    %c0_1 = arith.constant 0 : index
    %1 = memref.load %arg1[%c0_1] : memref<10xf32, #tpu.memory_space<smem>>
    %c1 = arith.constant 1 : index
    %2 = memref.load %arg1[%c1] : memref<10xf32, #tpu.memory_space<smem>>
    %c0_2 = arith.constant 0 : index
    %c0_3 = arith.constant 0 : index
    %3 = vector.load %arg3[%c0_2, %c0_3] : memref<32x8xf32, #tpu.memory_space<vmem>>, vector<32x8xf32>
    %cst = arith.constant 1.000000e-07 : f32
    %4 = vector.broadcast %cst : f32 to vector<32x8xf32>
    %5 = arith.addf %3, %4 : vector<32x8xf32>
    %cst_4 = arith.constant 1.000000e+00 : f32
    %6 = vector.broadcast %cst_4 : f32 to vector<32x8xf32>
    %7 = arith.subf %6, %3 : vector<32x8xf32>
    %cst_5 = arith.constant 1.000000e-07 : f32
    %8 = vector.broadcast %cst_5 : f32 to vector<32x8xf32>
    %9 = arith.addf %7, %8 : vector<32x8xf32>
    %10 = arith.divf %5, %9 : vector<32x8xf32>
    %11 = math.log %10 : vector<32x8xf32>
    %12 = vector.broadcast %1 : f32 to vector<32x8xf32>
    %13 = arith.addf %12, %11 : vector<32x8xf32>
    %cst_6 = arith.constant 1.000000e+01 : f32
    %14 = vector.broadcast %cst_6 : f32 to vector<32x8xf32>
    %15 = arith.mulf %13, %14 : vector<32x8xf32>
    %cst_7 = arith.constant 0.000000e+00 : f32
    %16 = vector.broadcast %cst_7 : f32 to vector<32x8xf32>
    %17 = arith.subf %16, %15 : vector<32x8xf32>
    %18 = arith.negf %17 : vector<32x8xf32>
    %19 = math.exp %18 : vector<32x8xf32>
    %cst_8 = arith.constant 1.000000e+00 : f32
    %20 = vector.broadcast %cst_8 : f32 to vector<32x8xf32>
    %21 = arith.addf %20, %19 : vector<32x8xf32>
    %22 = arith.divf %20, %21 : vector<32x8xf32>
    %23 = vector.broadcast %2 : f32 to vector<32x8xf32>
    %24 = arith.mulf %22, %23 : vector<32x8xf32>
    %25 = arith.mulf %0, %24 : vector<32x8xf32>
    %c0_9 = arith.constant 0 : index
    %c0_10 = arith.constant 0 : index
    %26 = vector.load %arg8[%c0_9, %c0_10] : memref<32x32xf32, #tpu.memory_space<vmem>>, vector<32x32xf32>
    %cst_11 = arith.constant dense<0.000000e+00> : vector<32x8xf32>
    %27 = tpu.matmul %26, %25, %cst_11 {dimension_numbers = #tpu.dot_dimension_numbers<[1], [0], [0], [1], [0, 0, 1, 1], [], []>} : vector<32x32xf32>, vector<32x8xf32>, vector<32x8xf32> -> vector<32x8xf32>
    %c0_12 = arith.constant 0 : index
    %c0_13 = arith.constant 0 : index
    %28 = vector.load %arg9[%c0_12, %c0_13] : memref<32x1xf32, #tpu.memory_space<vmem>>, vector<32x1xf32>
    %29 = vector.broadcast %28 : vector<32x1xf32> to vector<32x8xf32>
    %30 = arith.addf %27, %29 : vector<32x8xf32>
    %cst_14 = arith.constant 0.000000e+00 : f32
    %31 = vector.broadcast %cst_14 : f32 to vector<32x8xf32>
    %32 = arith.maximumf %30, %31 : vector<32x8xf32>
    %c2 = arith.constant 2 : index
    %33 = memref.load %arg1[%c2] : memref<10xf32, #tpu.memory_space<smem>>
    %c3 = arith.constant 3 : index
    %34 = memref.load %arg1[%c3] : memref<10xf32, #tpu.memory_space<smem>>
    %c0_15 = arith.constant 0 : index
    %c0_16 = arith.constant 0 : index
    %35 = vector.load %arg4[%c0_15, %c0_16] : memref<32x8xf32, #tpu.memory_space<vmem>>, vector<32x8xf32>
    %cst_17 = arith.constant 1.000000e-07 : f32
    %36 = vector.broadcast %cst_17 : f32 to vector<32x8xf32>
    %37 = arith.addf %35, %36 : vector<32x8xf32>
    %cst_18 = arith.constant 1.000000e+00 : f32
    %38 = vector.broadcast %cst_18 : f32 to vector<32x8xf32>
    %39 = arith.subf %38, %35 : vector<32x8xf32>
    %cst_19 = arith.constant 1.000000e-07 : f32
    %40 = vector.broadcast %cst_19 : f32 to vector<32x8xf32>
    %41 = arith.addf %39, %40 : vector<32x8xf32>
    %42 = arith.divf %37, %41 : vector<32x8xf32>
    %43 = math.log %42 : vector<32x8xf32>
    %44 = vector.broadcast %33 : f32 to vector<32x8xf32>
    %45 = arith.addf %44, %43 : vector<32x8xf32>
    %cst_20 = arith.constant 1.000000e+01 : f32
    %46 = vector.broadcast %cst_20 : f32 to vector<32x8xf32>
    %47 = arith.mulf %45, %46 : vector<32x8xf32>
    %cst_21 = arith.constant 0.000000e+00 : f32
    %48 = vector.broadcast %cst_21 : f32 to vector<32x8xf32>
    %49 = arith.subf %48, %47 : vector<32x8xf32>
    %50 = arith.negf %49 : vector<32x8xf32>
    %51 = math.exp %50 : vector<32x8xf32>
    %cst_22 = arith.constant 1.000000e+00 : f32
    %52 = vector.broadcast %cst_22 : f32 to vector<32x8xf32>
    %53 = arith.addf %52, %51 : vector<32x8xf32>
    %54 = arith.divf %52, %53 : vector<32x8xf32>
    %55 = vector.broadcast %34 : f32 to vector<32x8xf32>
    %56 = arith.mulf %54, %55 : vector<32x8xf32>
    %57 = arith.mulf %32, %56 : vector<32x8xf32>
    %c0_23 = arith.constant 0 : index
    %c0_24 = arith.constant 0 : index
    %58 = vector.load %arg10[%c0_23, %c0_24] : memref<32x32xf32, #tpu.memory_space<vmem>>, vector<32x32xf32>
    %cst_25 = arith.constant dense<0.000000e+00> : vector<32x8xf32>
    %59 = tpu.matmul %58, %57, %cst_25 {dimension_numbers = #tpu.dot_dimension_numbers<[1], [0], [0], [1], [0, 0, 1, 1], [], []>} : vector<32x32xf32>, vector<32x8xf32>, vector<32x8xf32> -> vector<32x8xf32>
    %c0_26 = arith.constant 0 : index
    %c0_27 = arith.constant 0 : index
    %60 = vector.load %arg11[%c0_26, %c0_27] : memref<32x1xf32, #tpu.memory_space<vmem>>, vector<32x1xf32>
    %61 = vector.broadcast %60 : vector<32x1xf32> to vector<32x8xf32>
    %62 = arith.addf %59, %61 : vector<32x8xf32>
    %cst_28 = arith.constant 0.000000e+00 : f32
    %63 = vector.broadcast %cst_28 : f32 to vector<32x8xf32>
    %64 = arith.maximumf %62, %63 : vector<32x8xf32>
    %c4 = arith.constant 4 : index
    %65 = memref.load %arg1[%c4] : memref<10xf32, #tpu.memory_space<smem>>
    %c5 = arith.constant 5 : index
    %66 = memref.load %arg1[%c5] : memref<10xf32, #tpu.memory_space<smem>>
    %c0_29 = arith.constant 0 : index
    %c0_30 = arith.constant 0 : index
    %67 = vector.load %arg5[%c0_29, %c0_30] : memref<32x8xf32, #tpu.memory_space<vmem>>, vector<32x8xf32>
    %cst_31 = arith.constant 1.000000e-07 : f32
    %68 = vector.broadcast %cst_31 : f32 to vector<32x8xf32>
    %69 = arith.addf %67, %68 : vector<32x8xf32>
    %cst_32 = arith.constant 1.000000e+00 : f32
    %70 = vector.broadcast %cst_32 : f32 to vector<32x8xf32>
    %71 = arith.subf %70, %67 : vector<32x8xf32>
    %cst_33 = arith.constant 1.000000e-07 : f32
    %72 = vector.broadcast %cst_33 : f32 to vector<32x8xf32>
    %73 = arith.addf %71, %72 : vector<32x8xf32>
    %74 = arith.divf %69, %73 : vector<32x8xf32>
    %75 = math.log %74 : vector<32x8xf32>
    %76 = vector.broadcast %65 : f32 to vector<32x8xf32>
    %77 = arith.addf %76, %75 : vector<32x8xf32>
    %cst_34 = arith.constant 1.000000e+01 : f32
    %78 = vector.broadcast %cst_34 : f32 to vector<32x8xf32>
    %79 = arith.mulf %77, %78 : vector<32x8xf32>
    %cst_35 = arith.constant 0.000000e+00 : f32
    %80 = vector.broadcast %cst_35 : f32 to vector<32x8xf32>
    %81 = arith.subf %80, %79 : vector<32x8xf32>
    %82 = arith.negf %81 : vector<32x8xf32>
    %83 = math.exp %82 : vector<32x8xf32>
    %cst_36 = arith.constant 1.000000e+00 : f32
    %84 = vector.broadcast %cst_36 : f32 to vector<32x8xf32>
    %85 = arith.addf %84, %83 : vector<32x8xf32>
    %86 = arith.divf %84, %85 : vector<32x8xf32>
    %87 = vector.broadcast %66 : f32 to vector<32x8xf32>
    %88 = arith.mulf %86, %87 : vector<32x8xf32>
    %89 = arith.mulf %64, %88 : vector<32x8xf32>
    %c0_37 = arith.constant 0 : index
    %c0_38 = arith.constant 0 : index
    %90 = vector.load %arg12[%c0_37, %c0_38] : memref<16x32xf32, #tpu.memory_space<vmem>>, vector<16x32xf32>
    %cst_39 = arith.constant dense<0.000000e+00> : vector<16x8xf32>
    %91 = tpu.matmul %90, %89, %cst_39 {dimension_numbers = #tpu.dot_dimension_numbers<[1], [0], [0], [1], [0, 0, 1, 1], [], []>} : vector<16x32xf32>, vector<32x8xf32>, vector<16x8xf32> -> vector<16x8xf32>
    %c0_40 = arith.constant 0 : index
    %c0_41 = arith.constant 0 : index
    %92 = vector.load %arg13[%c0_40, %c0_41] : memref<16x1xf32, #tpu.memory_space<vmem>>, vector<16x1xf32>
    %93 = vector.broadcast %92 : vector<16x1xf32> to vector<16x8xf32>
    %94 = arith.addf %91, %93 : vector<16x8xf32>
    %cst_42 = arith.constant 0.000000e+00 : f32
    %95 = vector.broadcast %cst_42 : f32 to vector<16x8xf32>
    %96 = arith.maximumf %94, %95 : vector<16x8xf32>
    %c0_43 = arith.constant 0 : index
    %c0_44 = arith.constant 0 : index
    %97 = vector.load %arg14[%c0_43, %c0_44] : memref<16x2xf32, #tpu.memory_space<vmem>>, vector<16x2xf32>
    %c6 = arith.constant 6 : index
    %98 = memref.load %arg1[%c6] : memref<10xf32, #tpu.memory_space<smem>>
    %c7 = arith.constant 7 : index
    %99 = memref.load %arg1[%c7] : memref<10xf32, #tpu.memory_space<smem>>
    %c0_45 = arith.constant 0 : index
    %c0_46 = arith.constant 0 : index
    %100 = vector.load %arg6[%c0_45, %c0_46] : memref<16x8xf32, #tpu.memory_space<vmem>>, vector<16x8xf32>
    %cst_47 = arith.constant 1.000000e-07 : f32
    %101 = vector.broadcast %cst_47 : f32 to vector<16x8xf32>
    %102 = arith.addf %100, %101 : vector<16x8xf32>
    %cst_48 = arith.constant 1.000000e+00 : f32
    %103 = vector.broadcast %cst_48 : f32 to vector<16x8xf32>
    %104 = arith.subf %103, %100 : vector<16x8xf32>
    %cst_49 = arith.constant 1.000000e-07 : f32
    %105 = vector.broadcast %cst_49 : f32 to vector<16x8xf32>
    %106 = arith.addf %104, %105 : vector<16x8xf32>
    %107 = arith.divf %102, %106 : vector<16x8xf32>
    %108 = math.log %107 : vector<16x8xf32>
    %109 = vector.broadcast %98 : f32 to vector<16x8xf32>
    %110 = arith.addf %109, %108 : vector<16x8xf32>
    %cst_50 = arith.constant 1.000000e+01 : f32
    %111 = vector.broadcast %cst_50 : f32 to vector<16x8xf32>
    %112 = arith.mulf %110, %111 : vector<16x8xf32>
    %cst_51 = arith.constant 0.000000e+00 : f32
    %113 = vector.broadcast %cst_51 : f32 to vector<16x8xf32>
    %114 = arith.subf %113, %112 : vector<16x8xf32>
    %115 = arith.negf %114 : vector<16x8xf32>
    %116 = math.exp %115 : vector<16x8xf32>
    %cst_52 = arith.constant 1.000000e+00 : f32
    %117 = vector.broadcast %cst_52 : f32 to vector<16x8xf32>
    %118 = arith.addf %117, %116 : vector<16x8xf32>
    %119 = arith.divf %117, %118 : vector<16x8xf32>
    %120 = vector.broadcast %99 : f32 to vector<16x8xf32>
    %121 = arith.mulf %119, %120 : vector<16x8xf32>
    %122 = arith.mulf %96, %121 : vector<16x8xf32>
    %c8 = arith.constant 8 : index
    %123 = memref.load %arg1[%c8] : memref<10xf32, #tpu.memory_space<smem>>
    %c9 = arith.constant 9 : index
    %124 = memref.load %arg1[%c9] : memref<10xf32, #tpu.memory_space<smem>>
    %c0_53 = arith.constant 0 : index
    %c0_54 = arith.constant 0 : index
    %125 = vector.load %arg7[%c0_53, %c0_54] : memref<16x8xf32, #tpu.memory_space<vmem>>, vector<16x8xf32>
    %cst_55 = arith.constant 1.000000e-07 : f32
    %126 = vector.broadcast %cst_55 : f32 to vector<16x8xf32>
    %127 = arith.addf %125, %126 : vector<16x8xf32>
    %cst_56 = arith.constant 1.000000e+00 : f32
    %128 = vector.broadcast %cst_56 : f32 to vector<16x8xf32>
    %129 = arith.subf %128, %125 : vector<16x8xf32>
    %cst_57 = arith.constant 1.000000e-07 : f32
    %130 = vector.broadcast %cst_57 : f32 to vector<16x8xf32>
    %131 = arith.addf %129, %130 : vector<16x8xf32>
    %132 = arith.divf %127, %131 : vector<16x8xf32>
    %133 = math.log %132 : vector<16x8xf32>
    %134 = vector.broadcast %123 : f32 to vector<16x8xf32>
    %135 = arith.addf %134, %133 : vector<16x8xf32>
    %cst_58 = arith.constant 1.000000e+01 : f32
    %136 = vector.broadcast %cst_58 : f32 to vector<16x8xf32>
    %137 = arith.mulf %135, %136 : vector<16x8xf32>
    %cst_59 = arith.constant 0.000000e+00 : f32
    %138 = vector.broadcast %cst_59 : f32 to vector<16x8xf32>
    %139 = arith.subf %138, %137 : vector<16x8xf32>
    %140 = arith.negf %139 : vector<16x8xf32>
    %141 = math.exp %140 : vector<16x8xf32>
    %cst_60 = arith.constant 1.000000e+00 : f32
    %142 = vector.broadcast %cst_60 : f32 to vector<16x8xf32>
    %143 = arith.addf %142, %141 : vector<16x8xf32>
    %144 = arith.divf %142, %143 : vector<16x8xf32>
    %145 = vector.broadcast %124 : f32 to vector<16x8xf32>
    %146 = arith.mulf %144, %145 : vector<16x8xf32>
    %147 = arith.mulf %96, %146 : vector<16x8xf32>
    %148 = vector.extract_strided_slice %97 {offsets = [0, 0], sizes = [16, 1], strides = [1, 1]} : vector<16x2xf32> to vector<16x1xf32>
    %149 = vector.broadcast %148 : vector<16x1xf32> to vector<16x8xf32>
    %150 = arith.mulf %149, %122 : vector<16x8xf32>
    %cst_61 = arith.constant dense<0.000000e+00> : vector<8xf32>
    %151 = vector.multi_reduction <add>, %150, %cst_61 [0] : vector<16x8xf32> to vector<8xf32>
    %152 = vector.shape_cast %151 : vector<8xf32> to vector<1x8xf32>
    %153 = vector.extract_strided_slice %97 {offsets = [0, 1], sizes = [16, 1], strides = [1, 1]} : vector<16x2xf32> to vector<16x1xf32>
    %154 = vector.broadcast %153 : vector<16x1xf32> to vector<16x8xf32>
    %155 = arith.mulf %154, %147 : vector<16x8xf32>
    %cst_62 = arith.constant dense<0.000000e+00> : vector<8xf32>
    %156 = vector.multi_reduction <add>, %155, %cst_62 [0] : vector<16x8xf32> to vector<8xf32>
    %157 = vector.shape_cast %156 : vector<8xf32> to vector<1x8xf32>
    %158 = tpu.concatenate %152, %157 in 0 : vector<1x8xf32>, vector<1x8xf32> -> vector<2x8xf32>
    %c0_63 = arith.constant 0 : index
    %c0_64 = arith.constant 0 : index
    %159 = vector.load %arg15[%c0_63, %c0_64] : memref<2x1xf32, #tpu.memory_space<vmem>>, vector<2x1xf32>
    %160 = vector.broadcast %159 : vector<2x1xf32> to vector<2x8xf32>
    %161 = arith.addf %158, %160 : vector<2x8xf32>
    %c0_65 = arith.constant 0 : index
    %c0_66 = arith.constant 0 : index
    %162 = vector.load %arg16[%c0_65, %c0_66] : memref<2x8xf32, #tpu.memory_space<vmem>>, vector<2x8xf32>
    tpu.vector_store %arg16[%c0_65, %c0_66], %161 {strides = array<i32>} : memref<2x8xf32, #tpu.memory_space<vmem>>, vector<2x8xf32>,
    return
  }
  func.func @transform_0(%arg0: i32, %arg1: memref<10xf32, #tpu.memory_space<smem>>) -> (i32, i32) {
    %c0_i32 = arith.constant 0 : i32
    %c0_i32_0 = arith.constant 0 : i32
    return %c0_i32, %arg0 : i32, i32
  }
  func.func @transform_1(%arg0: i32, %arg1: memref<10xf32, #tpu.memory_space<smem>>) -> (i32, i32) {
    %c0_i32 = arith.constant 0 : i32
    %c0_i32_0 = arith.constant 0 : i32
    return %c0_i32, %arg0 : i32, i32
  }
  func.func @transform_2(%arg0: i32, %arg1: memref<10xf32, #tpu.memory_space<smem>>) -> (i32, i32) {
    %c0_i32 = arith.constant 0 : i32
    %c0_i32_0 = arith.constant 0 : i32
    return %c0_i32, %arg0 : i32, i32
  }
  func.func @transform_3(%arg0: i32, %arg1: memref<10xf32, #tpu.memory_space<smem>>) -> (i32, i32) {
    %c0_i32 = arith.constant 0 : i32
    %c0_i32_0 = arith.constant 0 : i32
    return %c0_i32, %arg0 : i32, i32
  }
  func.func @transform_4(%arg0: i32, %arg1: memref<10xf32, #tpu.memory_space<smem>>) -> (i32, i32) {
    %c0_i32 = arith.constant 0 : i32
    %c0_i32_0 = arith.constant 0 : i32
    return %c0_i32, %arg0 : i32, i32
  }
  func.func @transform_5(%arg0: i32, %arg1: memref<10xf32, #tpu.memory_space<smem>>) -> (i32, i32) {
    %c0_i32 = arith.constant 0 : i32
    %c0_i32_0 = arith.constant 0 : i32
    return %c0_i32, %arg0 : i32, i32
  }
  func.func @transform_6(%arg0: i32, %arg1: memref<10xf32, #tpu.memory_space<smem>>) -> (i32, i32) {
    %c0_i32 = arith.constant 0 : i32
    %c0_i32_0 = arith.constant 0 : i32
    %c0_i32_1 = arith.constant 0 : i32
    return %c0_i32, %c0_i32_0 : i32, i32
  }
  func.func @transform_7(%arg0: i32, %arg1: memref<10xf32, #tpu.memory_space<smem>>) -> (i32, i32) {
    %c0_i32 = arith.constant 0 : i32
    %c0_i32_0 = arith.constant 0 : i32
    %c0_i32_1 = arith.constant 0 : i32
    return %c0_i32, %c0_i32_0 : i32, i32
  }
  func.func @transform_8(%arg0: i32, %arg1: memref<10xf32, #tpu.memory_space<smem>>) -> (i32, i32) {
    %c0_i32 = arith.constant 0 : i32
    %c0_i32_0 = arith.constant 0 : i32
    %c0_i32_1 = arith.constant 0 : i32
    return %c0_i32, %c0_i32_0 : i32, i32
  }
  func.func @transform_9(%arg0: i32, %arg1: memref<10xf32, #tpu.memory_space<smem>>) -> (i32, i32) {
    %c0_i32 = arith.constant 0 : i32
    %c0_i32_0 = arith.constant 0 : i32
    %c0_i32_1 = arith.constant 0 : i32
    return %c0_i32, %c0_i32_0 : i32, i32
  }
  func.func @transform_10(%arg0: i32, %arg1: memref<10xf32, #tpu.memory_space<smem>>) -> (i32, i32) {
    %c0_i32 = arith.constant 0 : i32
    %c0_i32_0 = arith.constant 0 : i32
    %c0_i32_1 = arith.constant 0 : i32
    return %c0_i32, %c0_i32_0 : i32, i32
  }
  func.func @transform_11(%arg0: i32, %arg1: memref<10xf32, #tpu.memory_space<smem>>) -> (i32, i32) {
    %c0_i32 = arith.constant 0 : i32
    %c0_i32_0 = arith.constant 0 : i32
    %c0_i32_1 = arith.constant 0 : i32
    return %c0_i32, %c0_i32_0 : i32, i32
  }
  func.func @transform_12(%arg0: i32, %arg1: memref<10xf32, #tpu.memory_space<smem>>) -> (i32, i32) {
    %c0_i32 = arith.constant 0 : i32
    %c0_i32_0 = arith.constant 0 : i32
    %c0_i32_1 = arith.constant 0 : i32
    return %c0_i32, %c0_i32_0 : i32, i32
  }
  func.func @transform_13(%arg0: i32, %arg1: memref<10xf32, #tpu.memory_space<smem>>) -> (i32, i32) {
    %c0_i32 = arith.constant 0 : i32
    %c0_i32_0 = arith.constant 0 : i32
    %c0_i32_1 = arith.constant 0 : i32
    return %c0_i32, %c0_i32_0 : i32, i32
  }
  func.func @transform_14(%arg0: i32, %arg1: memref<10xf32, #tpu.memory_space<smem>>) -> (i32, i32) {
    %c0_i32 = arith.constant 0 : i32
    %c0_i32_0 = arith.constant 0 : i32
    return %c0_i32, %arg0 : i32, i32
  }
}

</mosaic_0001>

<bundles_post_ra>
// kernel: model_forward.1
= control target key start
LH: loop header
LB: loop body
LE: loop exit
PB: predicated region body
PF: predicated region fallthrough
CT: control target
= control target key end

     0   :  { %s1244_s21 = smov [#allocation3]   ;;  %s1863_s0 = inlined_call_operand.vmem [shape: f32[10], index: 0, kind: input, shape index: {}]   ;;  %s1864_s1 = inlined_call_operand.vmem [shape: f32[32,8], index: 1, kind: input, shape index: {}]   ;;  %s1865_s2 = inlined_call_operand.vmem [shape: f32[32,8], index: 2, kind: input, shape index: {}]   ;;  %s1866_s3 = inlined_call_operand.vmem [shape: f32[32,8], index: 3, kind: input, shape index: {}]   ;;  %s1867_s4 = inlined_call_operand.vmem [shape: f32[32,8], index: 4, kind: input, shape index: {}]   ;;  %s1868_s5 = inlined_call_operand.vmem [shape: f32[16,8], index: 5, kind: input, shape index: {}]   ;;  %s1869_s6 = inlined_call_operand.vmem [shape: f32[16,8], index: 6, kind: input, shape index: {}]   ;;  %s1870_s7 = inlined_call_operand.vmem [shape: f32[32,32], index: 7, kind: input, shape index: {}]   ;;  %s1871_s8 = inlined_call_operand.vmem [shape: f32[32,1], index: 8, kind: input, shape index: {}]   ;;  %s1872_s9 = inlined_call_operand.vmem [shape: f32[32,32], index: 9, kind: input, shape index: {}]   ;;  %s1873_s10 = inlined_call_operand.vmem [shape: f32[32,1], index: 10, kind: input, shape index: {}]   ;;  %s1874_s11 = inlined_call_operand.vmem [shape: f32[16,32], index: 11, kind: input, shape index: {}]   ;;  %s1875_s12 = inlined_call_operand.vmem [shape: f32[16,1], index: 12, kind: input, shape index: {}]   ;;  %s1876_s13 = inlined_call_operand.vmem [shape: f32[16,2], index: 13, kind: input, shape index: {}]   ;;  %s1877_s14 = inlined_call_operand.vmem [shape: f32[2,1], index: 14, kind: input, shape index: {}]   ;;  %s1878_s15 = inlined_call_operand.vmem [shape: f32[2,8], index: 15, kind: output, shape index: {}]  }
   0x1   :  { %s21_s20 = sshll.u32 %s1863_s0, 4  ;;  %s22_s20 = int_to_ptr.vmem [resolvable:$true] %s21_s20 }
   0x2   :  { %24 = dma.vmem_to_smem %s22_s20, 16, %s1244_s21, [#allocation2] }
   0x3   :  { %1242 = dma.done.wait [#allocation2], 16 }
   0x4   :  { %1243 = vsyncadd [#allocation2], 4294967280 }
   0x5   :  { %27 = sfence }
   0x6   :  { %v65_v0 = vld [vmem:[%s1865_s2 + $0x18] sm:$0xff]  ;;  %v64_v1 = vld [vmem:[%s1865_s2 + $0x10] sm:$0xff]  ;;  %v63_v4 = vld [vmem:[%s1865_s2 + $0x8] sm:$0xff]  ;;  %s1050_s18 = sld [smem:[#allocation3 + $0x1]] }
   0x7   :  { %v73_v2 = vsub.f32 1.0, %v65_v0  ;;  %v72_v3 = vsub.f32 1.0, %v64_v1  ;;  %v1342_v5 = vld [vmem:[%s1865_s2] sm:$0xff]  ;;  %v71_v8 = vsub.f32 1.0, %v63_v4  ;;  %v69_v18 = vadd.f32 1e-07, %v65_v0 }
   0x8   :  { %v70_v9 = vsub.f32 1.0, %v1342_v5  ;;  %v68_v20 = vadd.f32 1e-07, %v64_v1  ;;  %v67_v45 = vadd.f32 1e-07, %v63_v4  ;;  %s60_s2 = sld [smem:[#allocation3]] }
   0x9   :  { %v77_v6 = vadd.f32 1e-07, %v73_v2  ;;  %v76_v7 = vadd.f32 1e-07, %v72_v3  ;;  %v75_v10 = vadd.f32 1e-07, %v71_v8 }
   0xa   :  { %v74_v11 = vadd.f32 1e-07, %v70_v9  ;;  %v66_v58 = vadd.f32 1e-07, %v1342_v5  ;;  %v251_v27 = vld [vmem:[%s1871_s8 + $0x18] sm:$0xff]  ;;  %v250_v38 = vld [vmem:[%s1871_s8 + $0x10] sm:$0xff] }
   0xb   :  { %1102 = vrcp.f32 %v77_v6  ;;  %v132_v12 = vand.u32 2147483647, %v77_v6  ;;  %v134_v13 = vand.u32 2147483648, %v77_v6  ;;  %v117_v15 = vand.u32 2147483647, %v76_v7  ;;  %s1571_s19 = sld [smem:[#allocation3 + $0x3]] }
   0xc   :  { %1104 = vrcp.f32 %v76_v7  ;;  %v119_v16 = vand.u32 2147483648, %v76_v7  ;;  %vm128_vm0 = vweird.f32 %v77_v6  ;;  %vm113_vm1 = vweird.f32 %v76_v7  ;;  %s1816_s26 = sld [smem:[#allocation3 + $0x7]] }
   0xd   :  { %1106 = vrcp.f32 %v75_v10  ;;  %vm1345_vm3 = vcmp.eq.f32.partialorder %v132_v12, 8.507059e+37  ;;  %v135_v24 = vor.u32 1.1754944e-38, %v134_v13  ;;  %vm1349_vm5 = vcmp.eq.f32.partialorder %v117_v15, 8.507059e+37  ;;  %s1822_s27 = sld [smem:[#allocation3 + $0x9]] }
   0xe   :  { %1108 = vrcp.f32 %v74_v11  ;;  %v120_v28 = vor.u32 1.1754944e-38, %v119_v16  ;;  %vm98_vm6 = vweird.f32 %v75_v10  ;;  %v102_v32 = vand.u32 2147483647, %v75_v10 }
   0xf   :  { %v104_v35 = vand.u32 2147483648, %v75_v10  ;;  %vm83_vm8 = vweird.f32 %v74_v11  ;;  %v89_v40 = vand.u32 2147483648, %v74_v11  ;;  %v87_v43 = vand.u32 2147483647, %v74_v11 }
  0x10   :  { %vm1365_vm12 = vcmp.eq.f32.partialorder %v102_v32, 8.507059e+37  ;;  %v146_v3 = vstv %s60_s2  ;;  %v1405_v47 = vstv %s1050_s18  ;;  %s1715_s18 = sld [smem:[#allocation3 + $0x5]] }
  0x11   :  { %v1103_v14 = vpop.eup %1102  ;;  %v105_v51 = vor.u32 1.1754944e-38, %v104_v35  ;;  %v90_v56 = vor.u32 1.1754944e-38, %v89_v40  ;;  %vm88_vm15 = vcmp.eq.f32.partialorder %v87_v43, 8.507059e+37 }
  0x12   :  { %v1105_v17 = vpop.eup %1104  ;;  %v124_v19 = vmul.f32 %v1103_v14, %v77_v6  ;;  %vm129_vm2 = vweird.f32 %v1103_v14 }
  0x13   :  { %v109_v21 = vmul.f32 %v1105_v17, %v76_v7  ;;  %v1107_v25 = vpop.eup %1106  ;;  %vm114_vm4 = vweird.f32 %v1105_v17  ;;  %vm1354_vm7 = vmor %vm128_vm0, %vm129_vm2 }
  0x14   :  { %v125_v22 = vsub.f32 1.0, %v124_v19  ;;  %v1109_v29 = vpop.eup %1108  ;;  %v94_v31 = vmul.f32 %v1107_v25, %v75_v10  ;;  %vm1359_vm9 = vmor %vm113_vm1, %vm114_vm4  ;;  %vm99_vm10 = vweird.f32 %v1107_v25 }
  0x15   :  { %v110_v26 = vsub.f32 1.0, %v109_v21  ;;  %v79_v36 = vmul.f32 %v1109_v29, %v74_v11  ;;  %vm84_vm11 = vweird.f32 %v1109_v29  ;;  %vm1374_vm13 = vmor %vm98_vm6, %vm99_vm10 }
  0x16   :  { %v126_v30 = vmul.f32 %v1103_v14, %v125_v22  ;;  %v95_v39 = vsub.f32 1.0, %v94_v31  ;;  %vm85_vm14 = vmor %vm83_vm8, %vm84_vm11 }
  0x17   :  { %v111_v34 = vmul.f32 %v1105_v17, %v110_v26  ;;  %v80_v42 = vsub.f32 1.0, %v79_v36 }
  0x18   :  { %v127_v37 = vadd.f32 %v1103_v14, %v126_v30  ;;  %v96_v46 = vmul.f32 %v1107_v25, %v95_v39  ;;  %v1245_v30 = vmov 0   ;;  %v248_v39 = vld [vmem:[%s1871_s8] sm:$0xff] }
  0x19   :  { %v112_v41 = vadd.f32 %v1105_v17, %v111_v34  ;;  %v81_v52 = vmul.f32 %v1109_v29, %v80_v42  ;;  %1096 = vset.pattern.permute.xlu0 %v1245_v30  ;;  %1097 = vset.pattern.permute.xlu1 %v1245_v30 }
  0x1a   :  { %v131_v44 = vsel %vm1354_vm7, %v1103_v14, %v127_v37  ;;  %v97_v55 = vadd.f32 %v1107_v25, %v96_v46  ;;  %269 = vperm.xlu0 %1096, %v251_v27   ;;  %1098 = vset.pattern.permute.xlu2 %v1245_v30 }
  0x1b   :  { %v136_v48 = vsel %vm1345_vm3, %v135_v24, %v131_v44  ;;  %v116_v49 = vsel %vm1359_vm9, %v1105_v17, %v112_v41  ;;  %v82_v59 = vadd.f32 %v1109_v29, %v81_v52 }
  0x1c   :  { %v137_v53 = vmul.f32 %v136_v48, %v69_v18  ;;  %v121_v54 = vsel %vm1349_vm5, %v120_v28, %v116_v49  ;;  %v101_v60 = vsel %vm1374_vm13, %v1107_v25, %v97_v55  ;;  %v249_v28 = vld [vmem:[%s1871_s8 + $0x8] sm:$0xff] }
  0x1d   :  { %v122_v57 = vmul.f32 %v121_v54, %v68_v20  ;;  %v106_v61 = vsel %vm1365_vm12, %v105_v51, %v101_v60  ;;  %v86_v62 = vsel %vm85_vm14, %v1109_v29, %v82_v59  ;;  %259 = vperm.xlu1 %1097, %v249_v28   ;;  %v762_v28 = vld [vmem:[%s1875_s12 + $0x8] sm:$0xff] }
  0x1e   :  { %1110 = vlog2.f32 %v137_v53  ;;  %v107_v63 = vmul.f32 %v106_v61, %v67_v45  ;;  %v91_v0 = vsel %vm88_vm15, %v90_v56, %v86_v62 }
  0x1f   :  { %1112 = vlog2.f32 %v122_v57  ;;  %v92_v1 = vmul.f32 %v91_v0, %v66_v58  ;;  %v507_v0 = vld [vmem:[%s1873_s10 + $0x8] sm:$0xff] }
  0x20   :  { %1114 = vlog2.f32 %v107_v63 }
  0x21   :  { %1116 = vlog2.f32 %v92_v1 }
  0x22   :  { %264 = vperm.xlu0 %1096, %v250_v38  }
  0x24   :  { %v1111_v2 = vpop.eup %1110 }
  0x25   :  { %v1113_v4 = vpop.eup %1112  ;;  %v145_v5 = vmul.f32 0.6931472, %v1111_v2  ;;  %254 = vperm.xlu1 %1097, %v248_v39  }
  0x26   :  { %v143_v6 = vmul.f32 0.6931472, %v1113_v4  ;;  %v1115_v8 = vpop.eup %1114 }
  0x27   :  { %v150_v7 = vadd.f32 %v146_v3, %v145_v5  ;;  %v1117_v10 = vpop.eup %1116  ;;  %v141_v12 = vmul.f32 0.6931472, %v1115_v8  ;;  %v506_v5 = vld [vmem:[%s1873_s10] sm:$0xff] }
  0x28   :  { %v149_v9 = vadd.f32 %v146_v3, %v143_v6  ;;  %v139_v14 = vmul.f32 0.6931472, %v1117_v10 }
  0x29   :  { %v154_v11 = vmul.f32 10.0, %v150_v7  ;;  %v148_v16 = vadd.f32 %v146_v3, %v141_v12  ;;  %v59_v12 = vld [vmem:[%s1864_s1 + $0x18] sm:$0xff] }
  0x2a   :  { %v153_v13 = vmul.f32 10.0, %v149_v9  ;;  %v147_v18 = vadd.f32 %v146_v3, %v139_v14  ;;  %517 = vperm.xlu0 %1096, %v507_v0  }
  0x2b   :  { %v158_v15 = vsub.f32 0.0, %v154_v11  ;;  %v152_v20 = vmul.f32 10.0, %v148_v16 }
  0x2c   :  { %v157_v17 = vsub.f32 0.0, %v153_v13  ;;  %v151_v22 = vmul.f32 10.0, %v147_v18 }
  0x2d   :  { %v1054_v19 = vmul.f32 -1.442695, %v158_v15  ;;  %v156_v23 = vsub.f32 0.0, %v152_v20  ;;  %512 = vperm.xlu1 %1097, %v506_v5  }
  0x2e   :  { %v1053_v21 = vmul.f32 -1.442695, %v157_v17  ;;  %v155_v24 = vsub.f32 0.0, %v151_v22 }
  0x2f   :  { %1118 = vpow2.f32 %v1054_v19  ;;  %v1052_v25 = vmul.f32 -1.442695, %v156_v23  ;;  %v58_v19 = vld [vmem:[%s1864_s1 + $0x10] sm:$0xff] }
  0x30   :  { %1120 = vpow2.f32 %v1053_v21  ;;  %v1051_v26 = vmul.f32 -1.442695, %v155_v24 }
  0x31   :  { %1122 = vpow2.f32 %v1052_v25 }
  0x32   :  { %1124 = vpow2.f32 %v1051_v26  ;;  %770 = vperm.xlu0 %1096, %v762_v28  }
  0x35   :  { %v1119_v29 = vpop.eup %1118 }
  0x36   :  { %v1121_v31 = vpop.eup %1120  ;;  %v174_v32 = vadd.f32 1.0, %v1119_v29  ;;  %v1477_v29 = vld [vmem:[%s1876_s13] sm:$0xff] }
  0x37   :  { %v173_v33 = vadd.f32 1.0, %v1121_v31  ;;  %v1123_v34 = vpop.eup %1122  ;;  %996 = vperm.xlu1 %1097, %v1477_v29  }
  0x38   :  { %1126 = vrcp.f32 %v174_v32  ;;  %v1125_v35 = vpop.eup %1124  ;;  %v172_v36 = vadd.f32 1.0, %v1123_v34  ;;  %v229_v40 = vand.u32 2147483647, %v174_v32  ;;  %v231_v41 = vand.u32 2147483648, %v174_v32 }
  0x39   :  { %1128 = vrcp.f32 %v173_v33  ;;  %v1396_v37 = vadd.f32 1.0, %v1125_v35  ;;  %v214_v43 = vand.u32 2147483647, %v173_v33  ;;  %v216_v44 = vand.u32 2147483648, %v173_v33 }
  0x3a   :  { %1130 = vrcp.f32 %v172_v36  ;;  %vm225_vm0 = vweird.f32 %v174_v32  ;;  %vm210_vm1 = vweird.f32 %v173_v33  ;;  %vm1407_vm3 = vcmp.eq.f32.partialorder %v229_v40, 8.507059e+37 }
  0x3b   :  { %1132 = vrcp.f32 %v1396_v37  ;;  %v232_v51 = vor.u32 1.1754944e-38, %v231_v41  ;;  %vm1411_vm5 = vcmp.eq.f32.partialorder %v214_v43, 8.507059e+37  ;;  %v217_v55 = vor.u32 1.1754944e-38, %v216_v44  ;;  %v245_v41 = vld [vmem:[%s1870_s7 + $0x8] sm:$0xff]  ;;  %v246_v43 = vld [vmem:[%s1870_s7 + $0x10] sm:$0xff]  ;;  %v247_v44 = vld [vmem:[%s1870_s7 + $0x18] sm:$0xff] }
  0x3c   :  { %vm195_vm6 = vweird.f32 %v172_v36  ;;  %v199_v59 = vand.u32 2147483647, %v172_v36  ;;  %v201_v62 = vand.u32 2147483648, %v172_v36  ;;  %vm180_vm8 = vweird.f32 %v1396_v37 }
  0x3d   :  { %v186_v4 = vand.u32 2147483648, %v1396_v37  ;;  %v184_v8 = vand.u32 2147483647, %v1396_v37 }
  0x3e   :  { %v1127_v42 = vpop.eup %1126  ;;  %vm1438_vm12 = vcmp.eq.f32.partialorder %v199_v59, 8.507059e+37  ;;  %v202_v16 = vor.u32 1.1754944e-38, %v201_v62 }
  0x3f   :  { %v1129_v45 = vpop.eup %1128  ;;  %v221_v46 = vmul.f32 %v1127_v42, %v174_v32  ;;  %vm226_vm2 = vweird.f32 %v1127_v42  ;;  %v187_v23 = vor.u32 1.1754944e-38, %v186_v4  ;;  %vm185_vm15 = vcmp.eq.f32.partialorder %v184_v8, 8.507059e+37  ;;  %v57_v32 = vld [vmem:[%s1864_s1 + $0x8] sm:$0xff] }
  0x40   :  { %v206_v48 = vmul.f32 %v1129_v45, %v173_v33  ;;  %v1131_v52 = vpop.eup %1130  ;;  %vm211_vm4 = vweird.f32 %v1129_v45  ;;  %vm1416_vm7 = vmor %vm225_vm0, %vm226_vm2  ;;  %vm272_vm0 = vcmask 261120  }
  0x41   :  { %v222_v49 = vsub.f32 1.0, %v221_v46  ;;  %v1133_v56 = vpop.eup %1132  ;;  %v191_v58 = vmul.f32 %v1131_v52, %v172_v36  ;;  %vm1427_vm9 = vmor %vm210_vm1, %vm211_vm4  ;;  %vm196_vm10 = vweird.f32 %v1131_v52  ;;  %v56_v36 = vld [vmem:[%s1864_s1] sm:$0xff] }
  0x42   :  { %v207_v53 = vsub.f32 1.0, %v206_v48  ;;  %v176_v63 = vmul.f32 %v1133_v56, %v1396_v37  ;;  %vm181_vm11 = vweird.f32 %v1133_v56  ;;  %vm1451_vm13 = vmor %vm195_vm6, %vm196_vm10  ;;  %v322_v48 = vld [vmem:[%s1866_s3 + $0x10] sm:$0xff] }
  0x43   :  { %v223_v57 = vmul.f32 %v1127_v42, %v222_v49  ;;  %v192_v3 = vsub.f32 1.0, %v191_v58  ;;  %vm1464_vm14 = vmor %vm180_vm8, %vm181_vm11  ;;  %v330_v49 = vsub.f32 1.0, %v322_v48 }
  0x44   :  { %v208_v61 = vmul.f32 %v1129_v45, %v207_v53  ;;  %v177_v7 = vsub.f32 1.0, %v176_v63  ;;  %v1517_v53 = vld [vmem:[%s1866_s3] sm:$0xff] }
  0x45   :  { %v224_v1 = vadd.f32 %v1127_v42, %v223_v57  ;;  %v193_v10 = vmul.f32 %v1131_v52, %v192_v3  ;;  %v328_v54 = vsub.f32 1.0, %v1517_v53 }
  0x46   :  { %v209_v6 = vadd.f32 %v1129_v45, %v208_v61  ;;  %v178_v17 = vmul.f32 %v1133_v56, %v177_v7 }
  0x47   :  { %v228_v9 = vsel %vm1416_vm7, %v1127_v42, %v224_v1  ;;  %v194_v21 = vadd.f32 %v1131_v52, %v193_v10  ;;  %v244_v42 = vld [vmem:[%s1870_s7] sm:$0xff]  ;;  %v332_v57 = vadd.f32 1e-07, %v328_v54 }
  0x48   :  { %v233_v13 = vsel %vm1407_vm3, %v232_v51, %v228_v9  ;;  %v213_v14 = vsel %vm1427_vm9, %v1129_v45, %v209_v6  ;;  %v179_v25 = vadd.f32 %v1133_v56, %v178_v17  ;;  %v321_v45 = vld [vmem:[%s1866_s3 + $0x8] sm:$0xff]  ;;  %v334_v51 = vadd.f32 1e-07, %v330_v49 }
  0x49   :  { %v239_v18 = vmul.f32 %v1405_v47, %v233_v13  ;;  %v218_v20 = vsel %vm1411_vm5, %v217_v55, %v213_v14  ;;  %v198_v27 = vsel %vm1451_vm13, %v1131_v52, %v194_v21  ;;  %v329_v46 = vsub.f32 1.0, %v321_v45  ;;  %v323_v55 = vld [vmem:[%s1866_s3 + $0x18] sm:$0xff]  ;;  %s1059_s3 = sld [smem:[#allocation3 + $0x2]] }
  0x4a   :  { %v238_v24 = vmul.f32 %v1405_v47, %v218_v20  ;;  %v203_v33 = vsel %vm1438_vm12, %v202_v16, %v198_v27  ;;  %v183_v34 = vsel %vm1464_vm14, %v1133_v56, %v179_v25  ;;  %v331_v56 = vsub.f32 1.0, %v323_v55 }
  0x4b   :  { %v243_v26 = vmul.f32 %v239_v18, %v59_v12  ;;  %v237_v35 = vmul.f32 %v1405_v47, %v203_v33  ;;  %v188_v37 = vsel %vm185_vm15, %v187_v23, %v183_v34  ;;  %vm371_vm3 = vweird.f32 %v334_v51 }
  0x4c   :  { %v242_v31 = vmul.f32 %v238_v24, %v58_v19  ;;  %v236_v38 = vmul.f32 %v1405_v47, %v188_v37  ;;  %v333_v47 = vadd.f32 1e-07, %v329_v46  ;;  %v335_v60 = vadd.f32 1e-07, %v331_v56 }
  0x4d   :  { %1085 = vmatpush.msra.mxu3 %v243_v26  ;;  %297 = vmatpush.msra.mxu0 %v243_v26  ;;  %v241_v39 = vmul.f32 %v237_v35, %v57_v32  ;;  %v377_v5 = vand.u32 2147483648, %v334_v51  ;;  %v375_v11 = vand.u32 2147483647, %v334_v51  ;;  %v325_v15 = vadd.f32 1e-07, %v321_v45 }
  0x4e   :  { %v240_v40 = vmul.f32 %v236_v38, %v56_v36  ;;  %1134 = vrcp.f32 %v333_v47  ;;  %vm356_vm1 = vweird.f32 %v333_v47  ;;  %v362_v3 = vand.u32 2147483648, %v333_v47 }
  0x4f   :  { %1086 = vmatpush.msra.mxu3 %v242_v31  ;;  %298 = vmatpush.msra.mxu0 %v242_v31  ;;  %1136 = vrcp.f32 %v334_v51  ;;  %v360_v7 = vand.u32 2147483647, %v333_v47  ;;  %v326_v18 = vadd.f32 1e-07, %v322_v48  ;;  %v378_v19 = vor.u32 1.1754944e-38, %v377_v5 }
  0x50   :  { %1138 = vrcp.f32 %v332_v57  ;;  %v363_v17 = vor.u32 1.1754944e-38, %v362_v3  ;;  %vm376_vm8 = vcmp.eq.f32.partialorder %v375_v11, 8.507059e+37  ;;  %vm341_vm9 = vweird.f32 %v332_v57 }
  0x51   :  { %1087 = vmatpush.msra.mxu3 %v241_v39  ;;  %299 = vmatpush.msra.mxu0 %v241_v39  ;;  %1140 = vrcp.f32 %v335_v60  ;;  %vm1533_vm7 = vcmp.eq.f32.partialorder %v360_v7, 8.507059e+37  ;;  %v392_v24 = vand.u32 2147483648, %v335_v60  ;;  %v347_v26 = vand.u32 2147483648, %v332_v57 }
  0x52   :  { %vm386_vm11 = vweird.f32 %v335_v60  ;;  %v390_v28 = vand.u32 2147483647, %v335_v60  ;;  %v327_v36 = vadd.f32 1e-07, %v323_v55  ;;  %v345_v38 = vand.u32 2147483647, %v332_v57 }
  0x53   :  { %1088 = vmatpush.msra.mxu3 %v240_v40  ;;  %300 = vmatpush.msra.mxu0 %v240_v40  ;;  %v393_v32 = vor.u32 1.1754944e-38, %v392_v24  ;;  %v348_v40 = vor.u32 1.1754944e-38, %v347_v26  ;;  %v404_v54 = vstv %s1059_s3 }
  0x54   :  { %1056 = vmatmul.msk.f32.vlgmr.msra.gmra.mxu3 %vm272_vm0, %v245_v41  ;;  %1055 = vmatmul.msk.f32.vlgmr.msra.gmra.mxu0 %vm272_vm0, %v244_v42  ;;  %v1135_v50 = vpop.eup %1134  ;;  %vm391_vm15 = vcmp.eq.f32.partialorder %v390_v28, 8.507059e+37 }
  0x55   :  { %v352_v52 = vmul.f32 %v1135_v50, %v333_v47  ;;  %v1137_v59 = vpop.eup %1136  ;;  %vm357_vm2 = vweird.f32 %v1135_v50 }
  0x56   :  { %v367_v61 = vmul.f32 %v1137_v59, %v334_v51  ;;  %v1139_v1 = vpop.eup %1138  ;;  %vm372_vm4 = vweird.f32 %v1137_v59  ;;  %vm1523_vm5 = vmor %vm356_vm1, %vm357_vm2  ;;  %vm346_vm1 = vcmp.eq.f32.partialorder %v345_v38, 8.507059e+37 }
  0x57   :  { %v353_v58 = vsub.f32 1.0, %v352_v52  ;;  %v1141_v4 = vpop.eup %1140  ;;  %v337_v8 = vmul.f32 %v1139_v1, %v332_v57  ;;  %vm1527_vm6 = vmor %vm371_vm3, %vm372_vm4  ;;  %vm342_vm10 = vweird.f32 %v1139_v1 }
  0x58   :  { %v368_v62 = vsub.f32 1.0, %v367_v61  ;;  %v382_v9 = vmul.f32 %v1141_v4, %v335_v60  ;;  %vm387_vm12 = vweird.f32 %v1141_v4  ;;  %vm1539_vm13 = vmor %vm341_vm9, %vm342_vm10 }
  0x59   :  { %v354_v63 = vmul.f32 %v1135_v50, %v353_v58  ;;  %v338_v13 = vsub.f32 1.0, %v337_v8  ;;  %vm388_vm14 = vmor %vm386_vm11, %vm387_vm12 }
  0x5a   :  { %v369_v0 = vmul.f32 %v1137_v59, %v368_v62  ;;  %v383_v14 = vsub.f32 1.0, %v382_v9 }
  0x5b   :  { %v355_v2 = vadd.f32 %v1135_v50, %v354_v63  ;;  %v339_v21 = vmul.f32 %v1139_v1, %v338_v13 }
  0x5c   :  { %1057 = vmatmul.msk.f32.gmra.mxu3 %vm272_vm0, %v246_v43  ;;  %v370_v10 = vadd.f32 %v1137_v59, %v369_v0  ;;  %v384_v22 = vmul.f32 %v1141_v4, %v383_v14  ;;  %v324_v43 = vadd.f32 1e-07, %v1517_v53 }
  0x5d   :  { %v359_v16 = vsel %vm1523_vm5, %v1135_v50, %v355_v2  ;;  %v340_v25 = vadd.f32 %v1139_v1, %v339_v21 }
  0x5e   :  { %v374_v23 = vsel %vm1527_vm6, %v1137_v59, %v370_v10  ;;  %v385_v27 = vadd.f32 %v1141_v4, %v384_v22  ;;  %v364_v34 = vsel %vm1533_vm7, %v363_v17, %v359_v16 }
  0x5f   :  { %v379_v33 = vsel %vm376_vm8, %v378_v19, %v374_v23  ;;  %v344_v35 = vsel %vm1539_vm13, %v1139_v1, %v340_v25 }
  0x60   :  { %v389_v37 = vsel %vm388_vm14, %v1141_v4, %v385_v27  ;;  %v380_v42 = vmul.f32 %v379_v33, %v326_v18  ;;  %v349_v45 = vsel %vm346_vm1, %v348_v40, %v344_v35 }
  0x61   :  { %v394_v39 = vsel %vm391_vm15, %v393_v32, %v389_v37  ;;  %v350_v46 = vmul.f32 %v349_v45, %v324_v43 }
  0x62   :  { %v395_v41 = vmul.f32 %v394_v39, %v327_v36  ;;  %v509_v36 = vld [vmem:[%s1873_s10 + $0x18] sm:$0xff] }
  0x63   :  { %527 = vperm.xlu2 %1098, %v509_v36  }
  0x64   :  { %1058 = vmatmul.msk.f32.gmra.mxu3 %vm272_vm0, %v247_v44  ;;  %v365_v44 = vmul.f32 %v364_v34, %v325_v15  ;;  %1142 = vlog2.f32 %v395_v41 }
  0x65   :  { %1144 = vlog2.f32 %v380_v42 }
  0x66   :  { %1146 = vlog2.f32 %v365_v44 }
  0x67   :  { %1148 = vlog2.f32 %v350_v46 }
  0x6a   :  { %v1143_v47 = vpop.eup %1142 }
  0x6b   :  { %v1145_v48 = vpop.eup %1144  ;;  %v403_v50 = vmul.f32 0.6931472, %v1143_v47 }
  0x6c   :  { %v1147_v49 = vpop.eup %1146  ;;  %v401_v51 = vmul.f32 0.6931472, %v1145_v48 }
  0x6d   :  { %v1149_v52 = vpop.eup %1148  ;;  %v399_v55 = vmul.f32 0.6931472, %v1147_v49  ;;  %v408_v56 = vadd.f32 %v404_v54, %v403_v50 }
  0x6e   :  { %v407_v57 = vadd.f32 %v404_v54, %v401_v51  ;;  %v397_v53 = vmul.f32 0.6931472, %v1149_v52 }
  0x6f   :  { %v406_v58 = vadd.f32 %v404_v54, %v399_v55  ;;  %v412_v59 = vmul.f32 10.0, %v408_v56 }
  0x70   :  { %v411_v60 = vmul.f32 10.0, %v407_v57  ;;  %v405_v61 = vadd.f32 %v404_v54, %v397_v53 }
  0x71   :  { %v410_v62 = vmul.f32 10.0, %v406_v58  ;;  %v416_v63 = vsub.f32 0.0, %v412_v59 }
  0x72   :  { %v415_v0 = vsub.f32 0.0, %v411_v60  ;;  %v409_v1 = vmul.f32 10.0, %v405_v61 }
  0x73   :  { %v414_v2 = vsub.f32 0.0, %v410_v62  ;;  %v1064_v3 = vmul.f32 -1.442695, %v416_v63  ;;  %v508_v62 = vld [vmem:[%s1873_s10 + $0x10] sm:$0xff] }
  0x74   :  { %v1063_v4 = vmul.f32 -1.442695, %v415_v0  ;;  %v413_v5 = vsub.f32 0.0, %v409_v1  ;;  %522 = vperm.xlu2 %1098, %v508_v62  }
  0x75   :  { %v1062_v6 = vmul.f32 -1.442695, %v414_v2  ;;  %1150 = vpow2.f32 %v1064_v3  ;;  %v493_v3 = vstv %s1571_s19 }
  0x76   :  { %1152 = vpow2.f32 %v1063_v4  ;;  %v1061_v7 = vmul.f32 -1.442695, %v413_v5 }
  0x77   :  { %1154 = vpow2.f32 %v1062_v6 }
  0x78   :  { %1156 = vpow2.f32 %v1061_v7 }
  0x7b   :  { %v1151_v8 = vpop.eup %1150 }
  0x7c   :  { %v1153_v9 = vpop.eup %1152  ;;  %v432_v11 = vadd.f32 1.0, %v1151_v8 }
  0x7d   :  { %v1155_v10 = vpop.eup %1154  ;;  %v431_v12 = vadd.f32 1.0, %v1153_v9 }
  0x7e   :  { %v1157_v13 = vpop.eup %1156  ;;  %v1548_v14 = vadd.f32 1.0, %v1155_v10  ;;  %1158 = vrcp.f32 %v432_v11  ;;  %vm483_vm2 = vweird.f32 %v432_v11  ;;  %v489_v34 = vand.u32 2147483648, %v432_v11 }
  0x7f   :  { %1160 = vrcp.f32 %v431_v12  ;;  %v1550_v15 = vadd.f32 1.0, %v1157_v13  ;;  %v487_v38 = vand.u32 2147483647, %v432_v11  ;;  %vm468_vm4 = vweird.f32 %v431_v12 }
  0x80   :  { %1162 = vrcp.f32 %v1548_v14  ;;  %v474_v42 = vand.u32 2147483648, %v431_v12  ;;  %vm453_vm7 = vweird.f32 %v1548_v14  ;;  %v472_v44 = vand.u32 2147483647, %v431_v12 }
  0x81   :  { %1164 = vrcp.f32 %v1550_v15  ;;  %v490_v46 = vor.u32 1.1754944e-38, %v489_v34  ;;  %v457_v49 = vand.u32 2147483647, %v1548_v14  ;;  %v459_v50 = vand.u32 2147483648, %v1548_v14  ;;  %v578_v34 = vld [vmem:[%s1867_s4 + $0x8] sm:$0xff] }
  0x82   :  { %vm488_vm10 = vcmp.eq.f32.partialorder %v487_v38, 8.507059e+37  ;;  %vm438_vm11 = vweird.f32 %v1550_v15  ;;  %v475_v52 = vor.u32 1.1754944e-38, %v474_v42  ;;  %v442_v55 = vand.u32 2147483647, %v1550_v15 }
  0x83   :  { %v444_v56 = vand.u32 2147483648, %v1550_v15  ;;  %vm473_vm14 = vcmp.eq.f32.partialorder %v472_v44, 8.507059e+37  ;;  %v460_v60 = vor.u32 1.1754944e-38, %v459_v50  ;;  %vm458_vm1 = vcmp.eq.f32.partialorder %v457_v49, 8.507059e+37 }
  0x84   :  { %v1159_v16 = vpop.eup %1158  ;;  %v586_v36 = vsub.f32 1.0, %v578_v34 }
  0x85   :  { %v1554_v17 = vpop.eup %1160  ;;  %v479_v19 = vmul.f32 %v1159_v16, %v432_v11  ;;  %vm484_vm3 = vweird.f32 %v1159_v16  ;;  %v445_v5 = vor.u32 1.1754944e-38, %v444_v56 }
  0x86   :  { %v1556_v18 = vpop.eup %1162  ;;  %v464_v20 = vmul.f32 %v1554_v17, %v431_v12  ;;  %vm469_vm5 = vweird.f32 %v1554_v17  ;;  %vm1574_vm6 = vmor %vm483_vm2, %vm484_vm3  ;;  %vm443_vm2 = vcmp.eq.f32.partialorder %v442_v55, 8.507059e+37  ;;  %v590_v38 = vadd.f32 1e-07, %v586_v36 }
  0x87   :  { %v1559_v21 = vpop.eup %1164  ;;  %v449_v22 = vmul.f32 %v1556_v18, %v1548_v14  ;;  %v480_v23 = vsub.f32 1.0, %v479_v19  ;;  %vm454_vm8 = vweird.f32 %v1556_v18  ;;  %vm1582_vm9 = vmor %vm468_vm4, %vm469_vm5 }
  0x88   :  { %v465_v25 = vsub.f32 1.0, %v464_v20  ;;  %v434_v26 = vmul.f32 %v1559_v21, %v1550_v15  ;;  %vm439_vm12 = vweird.f32 %v1559_v21  ;;  %vm1595_vm13 = vmor %vm453_vm7, %vm454_vm8  ;;  %v761_v20 = vld [vmem:[%s1875_s12] sm:$0xff]  ;;  %1166 = vrcp.f32 %v590_v38 }
  0x89   :  { %v450_v27 = vsub.f32 1.0, %v449_v22  ;;  %v481_v28 = vmul.f32 %v1159_v16, %v480_v23  ;;  %vm1605_vm15 = vmor %vm438_vm11, %vm439_vm12  ;;  %765 = vperm.xlu2 %1098, %v761_v20   ;;  %vm613_vm3 = vweird.f32 %v590_v38 }
  0x8a   :  { %v466_v32 = vmul.f32 %v1554_v17, %v465_v25  ;;  %v435_v33 = vsub.f32 1.0, %v434_v26  ;;  %v502_v26 = vld [vmem:[%s1872_s9] sm:$0xff] }
  0x8b   :  { %v451_v35 = vmul.f32 %v1556_v18, %v450_v27  ;;  %v482_v37 = vadd.f32 %v1159_v16, %v481_v28  ;;  %v503_v27 = vld [vmem:[%s1872_s9 + $0x8] sm:$0xff] }
  0x8c   :  { %v270_v31 = vpop.permute.xlu0 %269  ;;  %v467_v43 = vadd.f32 %v1554_v17, %v466_v32  ;;  %v436_v45 = vmul.f32 %v1559_v21, %v435_v33  ;;  %v1631_v28 = vld [vmem:[%s1876_s13 + $0x8] sm:$0xff]  ;;  %v1037_v32 = vld [vmem:[%s1877_s14] sm:$0x3]  ;;  %v505_v33 = vld [vmem:[%s1872_s9 + $0x18] sm:$0xff] }
  0x8d   :  { %v452_v48 = vadd.f32 %v1556_v18, %v451_v35  ;;  %v486_v51 = vsel %vm1574_vm6, %v1159_v16, %v482_v37  ;;  %v1653_v35 = vld [vmem:[%s1867_s4] sm:$0xff] }
  0x8e   :  { %v471_v57 = vsel %vm1582_vm9, %v1554_v17, %v467_v43  ;;  %v437_v53 = vadd.f32 %v1559_v21, %v436_v45  ;;  %v491_v59 = vsel %vm488_vm10, %v490_v46, %v486_v51  ;;  %v585_v37 = vsub.f32 1.0, %v1653_v35  ;;  %v1167_v42 = vpop.eup %1166  ;;  %v580_v46 = vld [vmem:[%s1867_s4 + $0x18] sm:$0xff] }
  0x8f   :  { %v260_v39 = vpop.permute.xlu1 %259  ;;  %v456_v0 = vsel %vm1595_vm13, %v1556_v18, %v452_v48  ;;  %v476_v4 = vsel %vm473_vm14, %v475_v52, %v471_v57  ;;  %v497_v8 = vmul.f32 %v493_v3, %v491_v59  ;;  %v609_v44 = vmul.f32 %v1167_v42, %v590_v38 }
  0x90   :  { %v441_v9 = vsel %vm1605_vm15, %v1559_v21, %v437_v53  ;;  %v461_v11 = vsel %vm458_vm1, %v460_v60, %v456_v0  ;;  %v496_v15 = vmul.f32 %v493_v3, %v476_v4  ;;  %v588_v47 = vsub.f32 1.0, %v580_v46 }
  0x91   :  { %v446_v16 = vsel %vm443_vm2, %v445_v5, %v441_v9  ;;  %v495_v19 = vmul.f32 %v493_v3, %v461_v11  ;;  %1001 = vperm.xlu2 %1098, %v1631_v28   ;;  %v610_v48 = vsub.f32 1.0, %v609_v44  ;;  %vm614_vm4 = vweird.f32 %v1167_v42 }
  0x92   :  { %v592_v50 = vadd.f32 1e-07, %v588_v47  ;;  %v619_v53 = vand.u32 2147483648, %v590_v38  ;;  %v617_v59 = vand.u32 2147483647, %v590_v38  ;;  %vm1669_vm7 = vmor %vm613_vm3, %vm614_vm4 }
  0x93   :  { %v611_v55 = vmul.f32 %v1167_v42, %v610_v48 }
  0x94   :  { %v265_v58 = vpop.permute.xlu0 %264  ;;  %v620_v4 = vor.u32 1.1754944e-38, %v619_v53  ;;  %vm618_vm11 = vcmp.eq.f32.partialorder %v617_v59, 8.507059e+37  ;;  %vm643_vm14 = vweird.f32 %v592_v50 }
  0x97   :  { %v255_v10 = vpop.permute.xlu1 %254 }
  0x99   :  { %1040 = vperm.xlu2 %1098, %v1037_v32   ;;  %v581_v32 = vadd.f32 1e-07, %v1653_v35 }
  0xd1   :  { %v302_v1 = vpop.f32.mrf.mxu0 }
  0xd2   :  { %v303_v13 = vadd.f32 %v302_v1, %v255_v10 }
  0xd4   :  { %v314_v22 = vmax.f32 %v303_v13, 0.0 }
  0xd7   :  { %v305_v24 = vpop.f32.mrf.mxu3 }
  0xd8   :  { %v306_v6 = vadd.f32 %v305_v24, %v260_v39  ;;  %v494_v24 = vmul.f32 %v493_v3, %v446_v16  ;;  %v1656_v39 = vadd.f32 1e-07, %v585_v37  ;;  %v582_v16 = vadd.f32 1e-07, %v578_v34 }
  0xda   :  { %v315_v17 = vmax.f32 %v306_v6, 0.0  ;;  %v498_v25 = vmul.f32 %v494_v24, %v314_v22  ;;  %1168 = vrcp.f32 %v1656_v39  ;;  %vm598_vm9 = vweird.f32 %v1656_v39 }
  0xdb   :  { %v604_v9 = vand.u32 2147483648, %v1656_v39  ;;  %v602_v13 = vand.u32 2147483647, %v1656_v39 }
  0xdc   :  { %v499_v21 = vmul.f32 %v495_v19, %v315_v17  ;;  %v647_v19 = vand.u32 2147483647, %v592_v50 }
  0xdd   :  { %v605_v24 = vor.u32 1.1754944e-38, %v604_v9  ;;  %vm603_vm3 = vcmp.eq.f32.partialorder %v602_v13, 8.507059e+37 }
  0xde   :  { %vm648_vm2 = vcmp.eq.f32.partialorder %v647_v19, 8.507059e+37 }
  0xdf   :  { %v308_v40 = vpop.f32.mrf.mxu3 }
  0xe0   :  { %v309_v63 = vadd.f32 %v308_v40, %v265_v58  ;;  %v579_v40 = vld [vmem:[%s1867_s4 + $0x10] sm:$0xff]  ;;  %v1662_v45 = vpop.eup %1168  ;;  %v612_v58 = vadd.f32 %v1167_v42, %v611_v55  ;;  %s1069_s4 = sld [smem:[#allocation3 + $0x4]] }
  0xe1   :  { %v587_v41 = vsub.f32 1.0, %v579_v40  ;;  %v594_v51 = vmul.f32 %v1662_v45, %v1656_v39  ;;  %vm599_vm10 = vweird.f32 %v1662_v45 }
  0xe2   :  { %v316_v12 = vmax.f32 %v309_v63, 0.0  ;;  %v616_v6 = vsel %vm1669_vm7, %v1167_v42, %v612_v58  ;;  %vm1686_vm13 = vmor %vm598_vm9, %vm599_vm10 }
  0xe3   :  { %v591_v43 = vadd.f32 1e-07, %v587_v41  ;;  %v595_v56 = vsub.f32 1.0, %v594_v51  ;;  %v621_v17 = vsel %vm618_vm11, %v620_v4, %v616_v6 }
  0xe4   :  { %v500_v23 = vmul.f32 %v496_v15, %v316_v12  ;;  %v583_v15 = vadd.f32 1e-07, %v579_v40 }
  0xe5   :  { %1170 = vrcp.f32 %v591_v43  ;;  %vm628_vm5 = vweird.f32 %v591_v43  ;;  %v634_v61 = vand.u32 2147483648, %v591_v43  ;;  %v596_v63 = vmul.f32 %v1662_v45, %v595_v56 }
  0xe6   :  { %1172 = vrcp.f32 %v592_v50 }
  0xe7   :  { %v311_v2 = vpop.f32.mrf.mxu3 }
  0xe8   :  { %v312_v7 = vadd.f32 %v311_v2, %v270_v31  ;;  %v504_v31 = vld [vmem:[%s1872_s9 + $0x10] sm:$0xff]  ;;  %v632_v2 = vand.u32 2147483647, %v591_v43 }
  0xea   :  { %v317_v14 = vmax.f32 %v312_v7, 0.0  ;;  %v635_v7 = vor.u32 1.1754944e-38, %v634_v61  ;;  %vm633_vm12 = vcmp.eq.f32.partialorder %v632_v2, 8.507059e+37 }
  0xeb   :  { %v1171_v49 = vpop.eup %1170 }
  0xec   :  { %v501_v18 = vmul.f32 %v497_v8, %v317_v14  ;;  %v624_v52 = vmul.f32 %v1171_v49, %v591_v43  ;;  %vm629_vm6 = vweird.f32 %v1171_v49  ;;  %v1173_v60 = vpop.eup %1172  ;;  %v597_v8 = vadd.f32 %v1662_v45, %v596_v63 }
  0xed   :  { %v639_v0 = vmul.f32 %v1173_v60, %v592_v50  ;;  %vm1674_vm8 = vmor %vm628_vm5, %vm629_vm6  ;;  %v649_v14 = vand.u32 2147483648, %v592_v50  ;;  %vm644_vm15 = vweird.f32 %v1173_v60  ;;  %v661_v43 = vstv %s1069_s4 }
  0xee   :  { %554 = vmatpush.msrb.mxu0 %v501_v18  ;;  %1089 = vmatpush.msra.mxu1 %v501_v18  ;;  %v625_v54 = vsub.f32 1.0, %v624_v52  ;;  %vm645_vm1 = vmor %vm643_vm14, %vm644_vm15 }
  0xef   :  { %v640_v5 = vsub.f32 1.0, %v639_v0  ;;  %v650_v20 = vor.u32 1.1754944e-38, %v649_v14 }
  0xf0   :  { %555 = vmatpush.msrb.mxu0 %v500_v23  ;;  %1090 = vmatpush.msra.mxu1 %v500_v23  ;;  %v626_v57 = vmul.f32 %v1171_v49, %v625_v54  ;;  %v601_v23 = vsel %vm1686_vm13, %v1662_v45, %v597_v8 }
  0xf1   :  { %v641_v10 = vmul.f32 %v1173_v60, %v640_v5  ;;  %v606_v34 = vsel %vm603_vm3, %v605_v24, %v601_v23 }
  0xf2   :  { %556 = vmatpush.msrb.mxu0 %v499_v21  ;;  %1091 = vmatpush.msra.mxu1 %v499_v21  ;;  %v627_v1 = vadd.f32 %v1171_v49, %v626_v57  ;;  %v584_v21 = vadd.f32 1e-07, %v580_v46  ;;  %v607_v36 = vmul.f32 %v606_v34, %v581_v32 }
  0xf3   :  { %v642_v18 = vadd.f32 %v1173_v60, %v641_v10 }
  0xf4   :  { %557 = vmatpush.msrb.mxu0 %v498_v25  ;;  %1092 = vmatpush.msra.mxu1 %v498_v25  ;;  %v631_v11 = vsel %vm1674_vm8, %v1171_v49, %v627_v1 }
  0xf5   :  { %1065 = vmatmul.msk.f32.vlgmr.msrb.gmra.mxu0 %vm272_vm0, %v502_v26  ;;  %1066 = vmatmul.msk.f32.vlgmr.msra.gmra.mxu1 %vm272_vm0, %v503_v27  ;;  %v636_v22 = vsel %vm633_vm12, %v635_v7, %v631_v11  ;;  %v646_v25 = vsel %vm645_vm1, %v1173_v60, %v642_v18  ;;  %v528_v18 = vpop.permute.xlu2 %527 }
  0xf6   :  { %v651_v26 = vsel %vm648_vm2, %v650_v20, %v646_v25  ;;  %v1246_v25 = vmov 1  }
  0xf7   :  { %v652_v27 = vmul.f32 %v651_v26, %v584_v21  ;;  %1099 = vset.pattern.permute.xlu0 %v1246_v25  ;;  %1100 = vset.pattern.permute.xlu1 %v1246_v25 }
  0xf8   :  { %1017 = vperm.xlu0 %1099, %v1477_v29   ;;  %1021 = vperm.xlu1 %1100, %v1631_v28  }
  0xf9   :  { %1174 = vlog2.f32 %v652_v27 }
  0xfd   :  { %1067 = vmatmul.msk.f32.gmra.mxu1 %vm272_vm0, %v504_v31  ;;  %v637_v31 = vmul.f32 %v636_v22, %v583_v15 }
  0xff   :  { %1176 = vlog2.f32 %v637_v31  ;;  %v1175_v37 = vpop.eup %1174 }
 0x100   :  { %v660_v40 = vmul.f32 0.6931472, %v1175_v37  ;;  %1101 = vset.pattern.permute.xlu0 %v1245_v30 }
 0x102   :  { %v665_v45 = vadd.f32 %v661_v43, %v660_v40 }
 0x104   :  { %v669_v48 = vmul.f32 10.0, %v665_v45 }
 0x105   :  { %1068 = vmatmul.msk.f32.gmra.mxu1 %vm272_vm0, %v505_v33  ;;  %v622_v33 = vmul.f32 %v621_v17, %v582_v16  ;;  %v1177_v38 = vpop.eup %1176 }
 0x106   :  { %v658_v41 = vmul.f32 0.6931472, %v1177_v38  ;;  %v673_v52 = vsub.f32 0.0, %v669_v48 }
 0x107   :  { %1178 = vlog2.f32 %v622_v33 }
 0x108   :  { %1180 = vlog2.f32 %v607_v36  ;;  %v664_v46 = vadd.f32 %v661_v43, %v658_v41  ;;  %v1074_v57 = vmul.f32 -1.442695, %v673_v52 }
 0x10a   :  { %v668_v49 = vmul.f32 10.0, %v664_v46  ;;  %1182 = vpow2.f32 %v1074_v57  ;;  %v523_v46 = vpop.permute.xlu2 %522 }
 0x10c   :  { %v672_v54 = vsub.f32 0.0, %v668_v49  ;;  %v518_v49 = vpop.permute.xlu0 %517 }
 0x10d   :  { %v1179_v39 = vpop.eup %1178 }
 0x10e   :  { %v1181_v42 = vpop.eup %1180  ;;  %v656_v44 = vmul.f32 0.6931472, %v1179_v39  ;;  %v1073_v53 = vmul.f32 -1.442695, %v672_v54 }
 0x10f   :  { %v654_v47 = vmul.f32 0.6931472, %v1181_v42 }
 0x110   :  { %v663_v35 = vadd.f32 %v661_v43, %v656_v44  ;;  %1184 = vpow2.f32 %v1073_v53  ;;  %v1183_v61 = vpop.eup %1182 }
 0x111   :  { %v662_v50 = vadd.f32 %v661_v43, %v654_v47  ;;  %v689_v0 = vadd.f32 1.0, %v1183_v61  ;;  %v513_v61 = vpop.permute.xlu1 %512 }
 0x112   :  { %v667_v51 = vmul.f32 10.0, %v663_v35 }
 0x113   :  { %v666_v55 = vmul.f32 10.0, %v662_v50  ;;  %vm740_vm4 = vweird.f32 %v689_v0  ;;  %v746_v22 = vand.u32 2147483648, %v689_v0  ;;  %v744_v21 = vand.u32 2147483647, %v689_v0 }
 0x114   :  { %v671_v56 = vsub.f32 0.0, %v667_v51 }
 0x115   :  { %v670_v58 = vsub.f32 0.0, %v666_v55  ;;  %v747_v36 = vor.u32 1.1754944e-38, %v746_v22  ;;  %vm745_vm12 = vcmp.eq.f32.partialorder %v744_v21, 8.507059e+37  ;;  %v750_v55 = vstv %s1715_s18 }
 0x116   :  { %v1072_v59 = vmul.f32 -1.442695, %v671_v56  ;;  %v1185_v62 = vpop.eup %1184 }
 0x117   :  { %v1071_v60 = vmul.f32 -1.442695, %v670_v58  ;;  %v688_v1 = vadd.f32 1.0, %v1185_v62 }
 0x118   :  { %1186 = vpow2.f32 %v1072_v59 }
 0x119   :  { %1188 = vpow2.f32 %v1071_v60  ;;  %vm725_vm6 = vweird.f32 %v688_v1  ;;  %v731_v31 = vand.u32 2147483648, %v688_v1  ;;  %v729_v33 = vand.u32 2147483647, %v688_v1 }
 0x11a   :  { %1190 = vrcp.f32 %v689_v0 }
 0x11b   :  { %1192 = vrcp.f32 %v688_v1  ;;  %v732_v40 = vor.u32 1.1754944e-38, %v731_v31  ;;  %vm730_vm1 = vcmp.eq.f32.partialorder %v729_v33, 8.507059e+37 }
 0x11e   :  { %v1187_v63 = vpop.eup %1186 }
 0x11f   :  { %v1189_v2 = vpop.eup %1188  ;;  %v1695_v3 = vadd.f32 1.0, %v1187_v63 }
 0x120   :  { %v1697_v4 = vadd.f32 1.0, %v1189_v2  ;;  %v1191_v5 = vpop.eup %1190 }
 0x121   :  { %1194 = vrcp.f32 %v1695_v3  ;;  %v1701_v6 = vpop.eup %1192  ;;  %v736_v8 = vmul.f32 %v1191_v5, %v689_v0  ;;  %vm741_vm5 = vweird.f32 %v1191_v5  ;;  %vm710_vm9 = vweird.f32 %v1695_v3 }
 0x122   :  { %1196 = vrcp.f32 %v1697_v4  ;;  %v721_v9 = vmul.f32 %v1701_v6, %v688_v1  ;;  %vm726_vm7 = vweird.f32 %v1701_v6  ;;  %vm1718_vm8 = vmor %vm740_vm4, %vm741_vm5  ;;  %v714_v29 = vand.u32 2147483647, %v1695_v3 }
 0x123   :  { %v737_v12 = vsub.f32 1.0, %v736_v8  ;;  %vm1731_vm11 = vmor %vm725_vm6, %vm726_vm7  ;;  %v716_v28 = vand.u32 2147483648, %v1695_v3  ;;  %vm695_vm13 = vweird.f32 %v1697_v4  ;;  %v699_v42 = vand.u32 2147483647, %v1697_v4 }
 0x124   :  { %v722_v14 = vsub.f32 1.0, %v721_v9  ;;  %v701_v43 = vand.u32 2147483648, %v1697_v4  ;;  %vm715_vm3 = vcmp.eq.f32.partialorder %v714_v29, 8.507059e+37 }
 0x125   :  { %v738_v17 = vmul.f32 %v1191_v5, %v737_v12  ;;  %v717_v35 = vor.u32 1.1754944e-38, %v716_v28  ;;  %vm700_vm4 = vcmp.eq.f32.partialorder %v699_v42, 8.507059e+37  ;;  %v760_v12 = vld [vmem:[%s1874_s11 + $0x8] sm:$0xff] }
 0x126   :  { %v723_v19 = vmul.f32 %v1701_v6, %v722_v14  ;;  %v702_v57 = vor.u32 1.1754944e-38, %v701_v43  ;;  %v902_v14 = vld [vmem:[%s1869_s6] sm:$0xff] }
 0x127   :  { %v1703_v7 = vpop.eup %1194  ;;  %v739_v24 = vadd.f32 %v1191_v5, %v738_v17 }
 0x128   :  { %v1706_v10 = vpop.eup %1196  ;;  %v706_v11 = vmul.f32 %v1703_v7, %v1695_v3  ;;  %v724_v32 = vadd.f32 %v1701_v6, %v723_v19  ;;  %vm711_vm10 = vweird.f32 %v1703_v7  ;;  %v809_v19 = vld [vmem:[%s1868_s5 + $0x8] sm:$0xff] }
 0x129   :  { %v691_v15 = vmul.f32 %v1706_v10, %v1697_v4  ;;  %v743_v39 = vsel %vm1718_vm8, %v1191_v5, %v739_v24  ;;  %vm696_vm14 = vweird.f32 %v1706_v10  ;;  %vm1744_vm15 = vmor %vm710_vm9, %vm711_vm10  ;;  %v813_v22 = vsub.f32 1.0, %v809_v19 }
 0x12a   :  { %v707_v16 = vsub.f32 1.0, %v706_v11  ;;  %v728_v44 = vsel %vm1731_vm11, %v1701_v6, %v724_v32  ;;  %v748_v47 = vsel %vm745_vm12, %v747_v36, %v743_v39  ;;  %vm1754_vm2 = vmor %vm695_vm13, %vm696_vm14 }
 0x12b   :  { %v692_v20 = vsub.f32 1.0, %v691_v15  ;;  %v733_v56 = vsel %vm730_vm1, %v732_v40, %v728_v44  ;;  %v754_v59 = vmul.f32 %v750_v55, %v748_v47  ;;  %v815_v21 = vadd.f32 1e-07, %v813_v22 }
 0x12c   :  { %v708_v23 = vmul.f32 %v1703_v7, %v707_v16  ;;  %v753_v2 = vmul.f32 %v750_v55, %v733_v56  ;;  %v906_v16 = vsub.f32 1.0, %v902_v14 }
 0x12d   :  { %v693_v34 = vmul.f32 %v1706_v10, %v692_v20  ;;  %v903_v20 = vld [vmem:[%s1869_s6 + $0x8] sm:$0xff]  ;;  %vm836_vm12 = vweird.f32 %v815_v21  ;;  %s1081_s6 = sld [smem:[#allocation3 + $0x8]] }
 0x12e   :  { %v709_v38 = vadd.f32 %v1703_v7, %v708_v23  ;;  %v907_v23 = vsub.f32 1.0, %v903_v20 }
 0x12f   :  { %v694_v45 = vadd.f32 %v1706_v10, %v693_v34 }
 0x130   :  { %v713_v51 = vsel %vm1744_vm15, %v1703_v7, %v709_v38  ;;  %v1786_v25 = vadd.f32 1e-07, %v907_v23 }
 0x131   :  { %v698_v60 = vsel %vm1754_vm2, %v1706_v10, %v694_v45  ;;  %v718_v62 = vsel %vm715_vm3, %v717_v35, %v713_v51  ;;  %v759_v10 = vld [vmem:[%s1874_s11] sm:$0xff]  ;;  %v904_v45 = vadd.f32 1e-07, %v902_v14 }
 0x132   :  { %v703_v3 = vsel %vm700_vm4, %v702_v57, %v698_v60  ;;  %v752_v6 = vmul.f32 %v750_v55, %v718_v62  ;;  %v842_v57 = vand.u32 2147483648, %v815_v21  ;;  %vm930_vm15 = vweird.f32 %v1786_v25 }
 0x133   :  { %v751_v8 = vmul.f32 %v750_v55, %v703_v3  ;;  %v934_v3 = vand.u32 2147483647, %v1786_v25 }
 0x135   :  { %vm935_vm4 = vcmp.eq.f32.partialorder %v934_v3, 8.507059e+37 }
 0x172   :  { %v562_v13 = vpop.f32.mrf.mxu1  ;;  %v559_v52 = vpop.f32.mrf.mxu0 }
 0x173   :  { %v563_v53 = vadd.f32 %v562_v13, %v518_v49  ;;  %v560_v63 = vadd.f32 %v559_v52, %v513_v61  ;;  %v808_v13 = vld [vmem:[%s1868_s5] sm:$0xff]  ;;  %s1791_s5 = sld [smem:[#allocation3 + $0x6]]  ;;  %v843_v61 = vor.u32 1.1754944e-38, %v842_v57 }
 0x174   :  { %v812_v15 = vsub.f32 1.0, %v808_v13  ;;  %v810_v43 = vadd.f32 1e-07, %v808_v13 }
 0x175   :  { %v572_v4 = vmax.f32 %v563_v53, 0.0  ;;  %v571_v7 = vmax.f32 %v560_v63, 0.0  ;;  %v936_v53 = vand.u32 2147483648, %v1786_v25  ;;  %v811_v63 = vadd.f32 1e-07, %v809_v19 }
 0x176   :  { %v814_v17 = vadd.f32 1e-07, %v812_v15 }
 0x177   :  { %v756_v9 = vmul.f32 %v752_v6, %v572_v4  ;;  %v755_v11 = vmul.f32 %v751_v8, %v571_v7  ;;  %v937_v4 = vor.u32 1.1754944e-38, %v936_v53 }
 0x178   :  { %1198 = vrcp.f32 %v814_v17  ;;  %v827_v36 = vand.u32 2147483648, %v814_v17  ;;  %v825_v28 = vand.u32 2147483647, %v814_v17 }
 0x179   :  { %v850_v13 = vstv %s1791_s5 }
 0x17a   :  { %v565_v26 = vpop.f32.mrf.mxu1  ;;  %v828_v40 = vor.u32 1.1754944e-38, %v827_v36  ;;  %vm826_vm9 = vcmp.eq.f32.partialorder %v825_v28, 8.507059e+37 }
 0x17b   :  { %v566_v50 = vadd.f32 %v565_v26, %v523_v46 }
 0x17d   :  { %v573_v0 = vmax.f32 %v566_v50, 0.0 }
 0x17e   :  { %v1199_v24 = vpop.eup %1198 }
 0x17f   :  { %v757_v30 = vmul.f32 %v753_v2, %v573_v0  ;;  %v817_v27 = vmul.f32 %v1199_v24, %v814_v17  ;;  %vm822_vm5 = vweird.f32 %v1199_v24 }
 0x181   :  { %v818_v32 = vsub.f32 1.0, %v817_v27 }
 0x182   :  { %v568_v54 = vpop.f32.mrf.mxu1 }
 0x183   :  { %v569_v58 = vadd.f32 %v568_v54, %v528_v18  ;;  %v908_v18 = vadd.f32 1e-07, %v906_v16  ;;  %v819_v34 = vmul.f32 %v1199_v24, %v818_v32  ;;  %v944_v16 = vstv %s1081_s6 }
 0x185   :  { %v574_v1 = vmax.f32 %v569_v58, 0.0  ;;  %1200 = vrcp.f32 %v908_v18  ;;  %v921_v38 = vand.u32 2147483648, %v908_v18  ;;  %v820_v29 = vadd.f32 %v1199_v24, %v819_v34 }
 0x186   :  { %1202 = vrcp.f32 %v815_v21  ;;  %vm915_vm7 = vweird.f32 %v908_v18  ;;  %v919_v35 = vand.u32 2147483647, %v908_v18 }
 0x187   :  { %v758_v5 = vmul.f32 %v754_v59, %v574_v1  ;;  %1204 = vrcp.f32 %v1786_v25  ;;  %v922_v48 = vor.u32 1.1754944e-38, %v921_v38  ;;  %v840_v59 = vand.u32 2147483647, %v815_v21 }
 0x188   :  { %vm920_vm11 = vcmp.eq.f32.partialorder %v919_v35, 8.507059e+37  ;;  %v905_v1 = vadd.f32 1e-07, %v903_v20 }
 0x189   :  { %791 = vmatpush.msra.mxu2 %v758_v5  ;;  %vm841_vm1 = vcmp.eq.f32.partialorder %v840_v59, 8.507059e+37 }
 0x18b   :  { %792 = vmatpush.msra.mxu2 %v757_v30  ;;  %v1201_v26 = vpop.eup %1200 }
 0x18c   :  { %v911_v31 = vmul.f32 %v1201_v26, %v908_v18  ;;  %v1203_v39 = vpop.eup %1202  ;;  %vm916_vm8 = vweird.f32 %v1201_v26 }
 0x18d   :  { %793 = vmatpush.msra.mxu2 %v756_v9  ;;  %v1205_v42 = vpop.eup %1204  ;;  %vm917_vm10 = vmor %vm915_vm7, %vm916_vm8  ;;  %v832_v50 = vmul.f32 %v1203_v39, %v815_v21  ;;  %vm837_vm13 = vweird.f32 %v1203_v39 }
 0x18e   :  { %v912_v33 = vsub.f32 1.0, %v911_v31  ;;  %v926_v51 = vmul.f32 %v1205_v42, %v1786_v25  ;;  %vm1793_vm14 = vmor %vm836_vm12, %vm837_vm13  ;;  %vm931_vm2 = vweird.f32 %v1205_v42 }
 0x18f   :  { %794 = vmatpush.msra.mxu2 %v755_v11  ;;  %v833_v54 = vsub.f32 1.0, %v832_v50  ;;  %vm932_vm3 = vmor %vm930_vm15, %vm931_vm2 }
 0x190   :  { %1075 = vmatmul.msk.f32.vlgmr.msra.gmra.mxu2 %vm272_vm0, %v759_v10  ;;  %v913_v37 = vmul.f32 %v1201_v26, %v912_v33  ;;  %v927_v55 = vsub.f32 1.0, %v926_v51 }
 0x191   :  { %v834_v58 = vmul.f32 %v1203_v39, %v833_v54 }
 0x192   :  { %v914_v41 = vadd.f32 %v1201_v26, %v913_v37  ;;  %v928_v62 = vmul.f32 %v1205_v42, %v927_v55 }
 0x193   :  { %v835_v0 = vadd.f32 %v1203_v39, %v834_v58 }
 0x194   :  { %v918_v47 = vsel %vm917_vm10, %v1201_v26, %v914_v41  ;;  %v929_v2 = vadd.f32 %v1205_v42, %v928_v62 }
 0x195   :  { %v923_v52 = vsel %vm920_vm11, %v922_v48, %v918_v47  ;;  %v839_v5 = vsel %vm1793_vm14, %v1203_v39, %v835_v0 }
 0x196   :  { %v924_v56 = vmul.f32 %v923_v52, %v904_v45  ;;  %v844_v7 = vsel %vm841_vm1, %v843_v61, %v839_v5  ;;  %v933_v30 = vsel %vm932_vm3, %v1205_v42, %v929_v2 }
 0x197   :  { %v845_v8 = vmul.f32 %v844_v7, %v811_v63  ;;  %v938_v9 = vsel %vm935_vm4, %v937_v4, %v933_v30 }
 0x198   :  { %1076 = vmatmul.msk.f32.gmra.mxu2 %vm272_vm0, %v760_v12  ;;  %vm821_vm0 = vweird.f32 %v814_v17  ;;  %v939_v10 = vmul.f32 %v938_v9, %v905_v1 }
 0x199   :  { %vm823_vm6 = vmor %vm821_vm0, %vm822_vm5 }
 0x19a   :  { %v824_v44 = vsel %vm823_vm6, %v1199_v24, %v820_v29 }
 0x19b   :  { %v829_v46 = vsel %vm826_vm9, %v828_v40, %v824_v44 }
 0x19c   :  { %v830_v49 = vmul.f32 %v829_v46, %v810_v43 }
 0x19e   :  { %1206 = vlog2.f32 %v830_v49 }
 0x19f   :  { %1208 = vlog2.f32 %v924_v56 }
 0x1a0   :  { %1210 = vlog2.f32 %v845_v8 }
 0x1a1   :  { %1212 = vlog2.f32 %v939_v10 }
 0x1a4   :  { %v1207_v6 = vpop.eup %1206 }
 0x1a5   :  { %v1209_v11 = vpop.eup %1208  ;;  %v847_v12 = vmul.f32 0.6931472, %v1207_v6 }
 0x1a6   :  { %v941_v14 = vmul.f32 0.6931472, %v1209_v11  ;;  %v1211_v17 = vpop.eup %1210 }
 0x1a7   :  { %v851_v15 = vadd.f32 %v850_v13, %v847_v12  ;;  %v1213_v18 = vpop.eup %1212  ;;  %v849_v20 = vmul.f32 0.6931472, %v1211_v17 }
 0x1a8   :  { %v945_v19 = vadd.f32 %v944_v16, %v941_v14  ;;  %v943_v23 = vmul.f32 0.6931472, %v1213_v18 }
 0x1a9   :  { %v853_v22 = vmul.f32 10.0, %v851_v15  ;;  %v852_v24 = vadd.f32 %v850_v13, %v849_v20  ;;  %v766_v15 = vpop.permute.xlu2 %765  ;;  %v895_v20 = vstv %s1816_s26 }
 0x1aa   :  { %v947_v21 = vmul.f32 10.0, %v945_v19  ;;  %v946_v25 = vadd.f32 %v944_v16, %v943_v23 }
 0x1ab   :  { %v855_v26 = vsub.f32 0.0, %v853_v22  ;;  %v854_v27 = vmul.f32 10.0, %v852_v24  ;;  %v989_v22 = vstv %s1822_s27  ;;  %v771_v24 = vpop.permute.xlu0 %770 }
 0x1ac   :  { %v949_v31 = vsub.f32 0.0, %v947_v21  ;;  %v948_v32 = vmul.f32 10.0, %v946_v25 }
 0x1ad   :  { %v1079_v33 = vmul.f32 -1.442695, %v855_v26  ;;  %v856_v34 = vsub.f32 0.0, %v854_v27 }
 0x1ae   :  { %v1083_v36 = vmul.f32 -1.442695, %v949_v31  ;;  %v950_v37 = vsub.f32 0.0, %v948_v32  ;;  %v997_v31 = vpop.permute.xlu1 %996 }
 0x1af   :  { %1214 = vpow2.f32 %v1079_v33  ;;  %v1080_v38 = vmul.f32 -1.442695, %v856_v34 }
 0x1b0   :  { %1216 = vpow2.f32 %v1083_v36  ;;  %v1084_v29 = vmul.f32 -1.442695, %v950_v37 }
 0x1b1   :  { %1218 = vpow2.f32 %v1080_v38 }
 0x1b2   :  { %1220 = vpow2.f32 %v1084_v29 }
 0x1b5   :  { %v1215_v28 = vpop.eup %1214 }
 0x1b6   :  { %v1217_v39 = vpop.eup %1216  ;;  %v863_v40 = vadd.f32 1.0, %v1215_v28 }
 0x1b7   :  { %v1219_v41 = vpop.eup %1218  ;;  %v957_v42 = vadd.f32 1.0, %v1217_v39 }
 0x1b8   :  { %v1221_v43 = vpop.eup %1220  ;;  %1222 = vrcp.f32 %v863_v40  ;;  %v1802_v44 = vadd.f32 1.0, %v1219_v41  ;;  %vm870_vm0 = vweird.f32 %v863_v40  ;;  %v876_v60 = vand.u32 2147483648, %v863_v40 }
 0x1b9   :  { %1224 = vrcp.f32 %v957_v42  ;;  %v1804_v45 = vadd.f32 1.0, %v1221_v43  ;;  %v874_v62 = vand.u32 2147483647, %v863_v40  ;;  %vm964_vm7 = vweird.f32 %v957_v42 }
 0x1ba   :  { %1226 = vrcp.f32 %v1802_v44  ;;  %v970_v63 = vand.u32 2147483648, %v957_v42  ;;  %v968_v2 = vand.u32 2147483647, %v957_v42  ;;  %v877_v5 = vor.u32 1.1754944e-38, %v876_v60 }
 0x1bb   :  { %1228 = vrcp.f32 %v1804_v45  ;;  %vm885_vm10 = vweird.f32 %v1802_v44  ;;  %vm875_vm12 = vcmp.eq.f32.partialorder %v874_v62, 8.507059e+37  ;;  %v891_v7 = vand.u32 2147483648, %v1802_v44 }
 0x1bc   :  { %vm979_vm13 = vweird.f32 %v1804_v45  ;;  %v971_v30 = vor.u32 1.1754944e-38, %v970_v63  ;;  %v889_v9 = vand.u32 2147483647, %v1802_v44  ;;  %v985_v11 = vand.u32 2147483648, %v1804_v45 }
 0x1bd   :  { %vm969_vm15 = vcmp.eq.f32.partialorder %v968_v2, 8.507059e+37  ;;  %v983_v14 = vand.u32 2147483647, %v1804_v45  ;;  %v892_v23 = vor.u32 1.1754944e-38, %v891_v7 }
 0x1be   :  { %v1223_v46 = vpop.eup %1222  ;;  %vm890_vm3 = vcmp.eq.f32.partialorder %v889_v9, 8.507059e+37  ;;  %v986_v26 = vor.u32 1.1754944e-38, %v985_v11 }
 0x1bf   :  { %v1225_v47 = vpop.eup %1224  ;;  %v866_v35 = vmul.f32 %v1223_v46, %v863_v40  ;;  %vm871_vm5 = vweird.f32 %v1223_v46  ;;  %vm984_vm4 = vcmp.eq.f32.partialorder %v983_v14, 8.507059e+37 }
 0x1c0   :  { %v1808_v48 = vpop.eup %1226  ;;  %v960_v49 = vmul.f32 %v1225_v47, %v957_v42  ;;  %vm1818_vm6 = vmor %vm870_vm0, %vm871_vm5  ;;  %vm965_vm8 = vweird.f32 %v1225_v47  ;;  %v1018_v42 = vpop.permute.xlu0 %1017  ;;  %vm1006_vm0 = vcmask 64512   ;;  %vm1035_vm5 = vcmask 1040384  }
 0x1c1   :  { %v1810_v50 = vpop.eup %1228  ;;  %v867_v51 = vsub.f32 1.0, %v866_v35  ;;  %v881_v52 = vmul.f32 %v1808_v48, %v1802_v44  ;;  %vm1828_vm9 = vmor %vm964_vm7, %vm965_vm8  ;;  %vm886_vm11 = vweird.f32 %v1808_v48  ;;  %v1022_v44 = vpop.permute.xlu1 %1021 }
 0x1c2   :  { %v961_v54 = vsub.f32 1.0, %v960_v49  ;;  %v975_v55 = vmul.f32 %v1810_v50, %v1804_v45  ;;  %vm980_vm14 = vweird.f32 %v1810_v50  ;;  %vm1842_vm1 = vmor %vm885_vm10, %vm886_vm11 }
 0x1c3   :  { %v868_v56 = vmul.f32 %v1223_v46, %v867_v51  ;;  %v882_v57 = vsub.f32 1.0, %v881_v52  ;;  %vm1848_vm2 = vmor %vm979_vm13, %vm980_vm14 }
 0x1c4   :  { %v962_v53 = vmul.f32 %v1225_v47, %v961_v54  ;;  %v976_v58 = vsub.f32 1.0, %v975_v55 }
 0x1c5   :  { %v869_v59 = vadd.f32 %v1223_v46, %v868_v56  ;;  %v883_v0 = vmul.f32 %v1808_v48, %v882_v57 }
 0x1c6   :  { %v963_v1 = vadd.f32 %v1225_v47, %v962_v53  ;;  %v977_v3 = vmul.f32 %v1810_v50, %v976_v58 }
 0x1c7   :  { %v873_v4 = vsel %vm1818_vm6, %v1223_v46, %v869_v59  ;;  %v884_v8 = vadd.f32 %v1808_v48, %v883_v0  ;;  %vm1044_vm6 = vcmask 58368  }
 0x1c8   :  { %v967_v10 = vsel %vm1828_vm9, %v1225_v47, %v963_v1  ;;  %v978_v13 = vadd.f32 %v1810_v50, %v977_v3  ;;  %v878_v17 = vsel %vm875_vm12, %v877_v5, %v873_v4 }
 0x1c9   :  { %v972_v21 = vsel %vm969_vm15, %v971_v30, %v967_v10  ;;  %v888_v25 = vsel %vm1842_vm1, %v1808_v48, %v884_v8  ;;  %v896_v33 = vmul.f32 %v895_v20, %v878_v17  ;;  %v1002_v48 = vpop.permute.xlu2 %1001 }
 0x1ca   :  { %v982_v27 = vsel %vm1848_vm2, %v1810_v50, %v978_v13  ;;  %v990_v34 = vmul.f32 %v989_v22, %v972_v21  ;;  %v893_v36 = vsel %vm890_vm3, %v892_v23, %v888_v25 }
 0x1cb   :  { %v987_v37 = vsel %vm984_vm4, %v986_v26, %v982_v27  ;;  %v897_v29 = vmul.f32 %v895_v20, %v893_v36 }
 0x1cc   :  { %v991_v41 = vmul.f32 %v989_v22, %v987_v37 }
 0x1d1   :  { %v1041_v5 = vpop.permute.xlu2 %1040 }
 0x213   :  { %v796_v16 = vpop.f32.mrf.mxu2 }
 0x214   :  { %v797_v19 = vadd.f32 %v796_v16, %v766_v15 }
 0x216   :  { %v802_v32 = vmax.f32 %v797_v19, 0.0 }
 0x218   :  { %v898_v28 = vmul.f32 %v896_v33, %v802_v32  ;;  %v992_v39 = vmul.f32 %v990_v34, %v802_v32 }
 0x21a   :  { %v1004_v45 = vmul.f32 %v997_v31, %v898_v28  ;;  %v1024_v46 = vmul.f32 %v1018_v42, %v992_v39 }
 0x21b   :  { %v799_v38 = vpop.f32.mrf.mxu2 }
 0x21c   :  { %v800_v40 = vadd.f32 %v799_v38, %v771_v24  ;;  %v1007_v51 = vsel %vm1006_vm0, %v1004_v45, 0.0  ;;  %v1026_v52 = vsel %vm1006_vm0, %v1024_v46, 0.0 }
 0x21e   :  { %v803_v43 = vmax.f32 %v800_v40, 0.0 }
 0x220   :  { %v899_v47 = vmul.f32 %v897_v29, %v803_v43  ;;  %v993_v35 = vmul.f32 %v991_v41, %v803_v43 }
 0x222   :  { %v1005_v49 = vmul.f32 %v1002_v48, %v899_v47  ;;  %v1025_v50 = vmul.f32 %v1022_v44, %v993_v35 }
 0x224   :  { %v1008_v54 = vsel %vm1006_vm0, %v1005_v49, 0.0  ;;  %v1027_v55 = vsel %vm1006_vm0, %v1025_v50, 0.0 }
 0x225   :  { %v1009_v56 = vadd.f32 %v1008_v54, %v1007_v51  ;;  %v1028_v57 = vadd.f32 %v1027_v55, %v1026_v52 }
 0x227   :  { %v1010_v53 = vrot.slane %v1009_v56, 4  ;;  %v1029_v58 = vrot.slane %v1028_v57, 4 }
 0x229   :  { %v1011_v59 = vadd.f32 %v1010_v53, %v1009_v56  ;;  %v1030_v60 = vadd.f32 %v1029_v58, %v1028_v57 }
 0x22b   :  { %v1012_v61 = vrot.slane %v1011_v59, 2  ;;  %v1031_v62 = vrot.slane %v1030_v60, 2 }
 0x22d   :  { %v1013_v63 = vadd.f32 %v1012_v61, %v1011_v59  ;;  %v1032_v0 = vadd.f32 %v1031_v62, %v1030_v60 }
 0x22f   :  { %v1014_v1 = vrot.slane %v1013_v63, 1  ;;  %v1033_v2 = vrot.slane %v1032_v0, 1 }
 0x231   :  { %v1015_v3 = vadd.f32 %v1014_v1, %v1013_v63  ;;  %v1034_v4 = vadd.f32 %v1033_v2, %v1032_v0 }
 0x233   :  { %v1036_v6 = vsel %vm1035_vm5, %v1015_v3, %v1034_v4 }
 0x234   :  { %v1043_v7 = vadd.f32 %v1041_v5, %v1036_v6 }
 0x236   :  { %1045 = vst.msk [vmem:[%s1878_s15] sm:$0x3] %vm1044_vm6, %v1043_v7 }

</bundles_post_ra>
